<compile_context>
chip_gen: v6e
topology: v6e:2x2x1
jax: 0.10.0
libtpu: 0.0.40
codegen_flags: <defaults>
</compile_context>

<pallas_src>
import jax
import jax.numpy as jnp
from jax.experimental import pallas as pl
from jax.experimental.pallas import tpu as pltpu


# Encoder9 layer widths: 10 Linear+BN+ReLU blocks, then Linear(512, 51).
LAYER_DIMS = [63, 512, 1024, 1024, 1024, 1024, 1024, 1024, 1024, 512, 512, 51]
NUM_LAYERS = len(LAYER_DIMS) - 1          # 11
D_PAD = 1024                              # padded feature width (lane-dense)
BN_EPS = 1e-5


# ----------------------------------------------------------------------------
# Fused Pallas kernel: one grid step per layer, activation resident in VMEM.
# ----------------------------------------------------------------------------
def _encoder_kernel(x_ref, w_ref, scale_ref, shift_ref, o_ref, h_ref):
    l = pl.program_id(0)
    last = pl.num_programs(0) - 1

    # Load the (padded) input into the resident activation buffer once.
    @pl.when(l == 0)
    def _():
        h_ref[...] = x_ref[...]

    # y = (h @ W_l) * scale_l + shift_l   (bias + eval-mode BN folded in).
    y = jnp.dot(h_ref[...].astype(jnp.bfloat16), w_ref[...],
                preferred_element_type=jnp.float32)
    y = y * scale_ref[...] + shift_ref[...]

    # Hidden layers: ReLU, keep result in VMEM for the next layer.
    @pl.when(l < last)
    def _():
        h_ref[...] = jnp.maximum(y, 0.0)

    # Final Linear layer: no ReLU, write the output block.
    @pl.when(l == last)
    def _():
        o_ref[...] = y


def encoder9_forward(x, w_stack, scale_stack, shift_stack):
    """x: [B, 63] f32 -> [B, 51] f32."""
    B, in_dim = x.shape
    b_pad = max(8, ((B + 7) // 8) * 8)

    # Pad batch to a multiple of 8 and features to D_PAD (zero padding is
    # exact: padded weight rows/cols, scales and shifts are zero).
    x_p = jnp.zeros((b_pad, D_PAD), jnp.float32).at[:B, :in_dim].set(x)

    out = pl.pallas_call(
        _encoder_kernel,
        out_shape=jax.ShapeDtypeStruct((b_pad, D_PAD), jnp.float32),
        grid_spec=pltpu.PrefetchScalarGridSpec(
            num_scalar_prefetch=0,
            grid=(NUM_LAYERS,),
            in_specs=[
                pl.BlockSpec((b_pad, D_PAD), lambda l: (0, 0)),       # x
                pl.BlockSpec((None, D_PAD, D_PAD), lambda l: (l, 0, 0)),  # W_l
                pl.BlockSpec((None, 1, D_PAD), lambda l: (l, 0, 0)),  # scale_l
                pl.BlockSpec((None, 1, D_PAD), lambda l: (l, 0, 0)),  # shift_l
            ],
            out_specs=pl.BlockSpec((b_pad, D_PAD), lambda l: (0, 0)),
            scratch_shapes=[pltpu.VMEM((b_pad, D_PAD), jnp.float32)],
        ),
        compiler_params=pltpu.CompilerParams(
            # Layer axis carries the activation -> strictly sequential.
            dimension_semantics=("arbitrary",),
        ),
    )(x_p, w_stack, scale_stack, shift_stack)

    return out[:B, :LAYER_DIMS[-1]]


# ----------------------------------------------------------------------------
# Parameter construction (deterministic, PyTorch-like uniform Linear init;
# BN running stats randomized to exercise the folded scale/shift path).
# ----------------------------------------------------------------------------
def make_params(key):
    layers = []
    for li in range(NUM_LAYERS):
        in_d, out_d = LAYER_DIMS[li], LAYER_DIMS[li + 1]
        key, kw, kb, kg, kbe, km, kv = jax.random.split(key, 7)
        bound = 1.0 / float(in_d) ** 0.5
        w = jax.random.uniform(kw, (in_d, out_d), jnp.float32, -bound, bound)
        b = jax.random.uniform(kb, (out_d,), jnp.float32, -bound, bound)
        if li < NUM_LAYERS - 1:  # Linear + BatchNorm1d(eval) + ReLU block
            gamma = 1.0 + 0.1 * jax.random.normal(kg, (out_d,), jnp.float32)
            beta = 0.1 * jax.random.normal(kbe, (out_d,), jnp.float32)
            mean = 0.1 * jax.random.normal(km, (out_d,), jnp.float32)
            var = jnp.abs(1.0 + 0.1 * jax.random.normal(kv, (out_d,), jnp.float32))
            inv_std = 1.0 / jnp.sqrt(var + BN_EPS)
            scale = gamma * inv_std
            shift = (b - mean) * scale + beta       # bias folded into BN shift
        else:                      # final plain Linear
            scale = jnp.ones((out_d,), jnp.float32)
            shift = b
        layers.append({"w": w, "scale": scale, "shift": shift})
    return layers


def pack_params(layers):
    """Stack + zero-pad to [L, D_PAD, D_PAD] bf16 weights and [L,1,D_PAD] f32
    scale/shift for layer-streamed BlockSpec access."""
    L = len(layers)
    w_stack = jnp.zeros((L, D_PAD, D_PAD), jnp.float32)
    scale_stack = jnp.zeros((L, 1, D_PAD), jnp.float32)
    shift_stack = jnp.zeros((L, 1, D_PAD), jnp.float32)
    for li, p in enumerate(layers):
        in_d, out_d = p["w"].shape
        w_stack = w_stack.at[li, :in_d, :out_d].set(p["w"])
        scale_stack = scale_stack.at[li, 0, :out_d].set(p["scale"])
        shift_stack = shift_stack.at[li, 0, :out_d].set(p["shift"])
    return w_stack.astype(jnp.bfloat16), scale_stack, shift_stack


# Pure-JAX reference mirroring the kernel's bf16-weight / bf16-activation,
# f32-accumulate arithmetic (for correctness checking only).
def reference_forward(x, layers):
    h = x
    for li, p in enumerate(layers):
        y = jnp.dot(h.astype(jnp.bfloat16), p["w"].astype(jnp.bfloat16),
                    preferred_element_type=jnp.float32)
        y = y * p["scale"] + p["shift"]
        h = jnp.maximum(y, 0.0) if li < len(layers) - 1 else y
    return h


if __name__ == "__main__":
    key = jax.random.PRNGKey(0)
    kx, kp = jax.random.split(key)

    B = 8
    x = jax.random.normal(kx, (B, LAYER_DIMS[0]), jnp.float32)

    layers = make_params(kp)
    w_stack, scale_stack, shift_stack = pack_params(layers)

    fwd = jax.jit(encoder9_forward)
    out = fwd(x, w_stack, scale_stack, shift_stack)
    out = jax.block_until_ready(out)

    assert out.shape == (B, LAYER_DIMS[-1]), out.shape
    assert out.dtype == jnp.float32
    assert bool(jnp.isfinite(out).all())

    ref = reference_forward(x, layers)
    max_err = float(jnp.max(jnp.abs(out - ref)))
    assert max_err < 1e-2, f"max abs err {max_err}"

    print("KERNEL_OK")
</pallas_src>

<mosaic_0001>
module attributes {stable_mosaic.version = 11 : i64} {
  func.func @_encoder_kernel(%arg0: i32, %arg1: memref<8x1024xf32, #tpu.memory_space<vmem>>, %arg2: memref<1x1024x1024xbf16, #tpu.memory_space<vmem>>, %arg3: memref<1x1x1024xf32, #tpu.memory_space<vmem>>, %arg4: memref<1x1x1024xf32, #tpu.memory_space<vmem>>, %arg5: memref<8x1024xf32, #tpu.memory_space<vmem>>, %arg6: memref<8x1024xf32, #tpu.memory_space<vmem>>) attributes {dimension_semantics = [#tpu.dimension_semantics<arbitrary>], iteration_bounds = array<i64: 11>, scalar_prefetch = 0 : i64, scratch_operands = 1 : i64, tpu.core_type = #tpu.core_type<tc>, window_params = [{pipeline_mode = #tpu.pipeline_mode<synchronous>, transform_indices = @transform_0, window_bounds = array<i64: 8, 1024>}, {transform_indices = @transform_1, window_bounds = array<i64: 1, 1024, 1024>}, {transform_indices = @transform_2, window_bounds = array<i64: 1, 1, 1024>}, {transform_indices = @transform_3, window_bounds = array<i64: 1, 1, 1024>}, {pipeline_mode = #tpu.pipeline_mode<synchronous>, transform_indices = @transform_4, window_bounds = array<i64: 8, 1024>}]} {
    %c0_i32 = arith.constant 0 : i32
    %0 = arith.cmpi eq, %arg0, %c0_i32 : i32
    %1 = arith.extui %0 : i1 to i32
    %c0_i32_0 = arith.constant 0 : i32
    %2 = arith.cmpi ne, %1, %c0_i32_0 : i32
    scf.if %2 {
      %c0_14 = arith.constant 0 : index
      %c0_15 = arith.constant 0 : index
      %22 = vector.load %arg1[%c0_14, %c0_15] : memref<8x1024xf32, #tpu.memory_space<vmem>>, vector<8x1024xf32>
      %c0_16 = arith.constant 0 : index
      %c0_17 = arith.constant 0 : index
      %23 = vector.load %arg6[%c0_16, %c0_17] : memref<8x1024xf32, #tpu.memory_space<vmem>>, vector<8x1024xf32>
      tpu.vector_store %arg6[%c0_16, %c0_17], %22 {strides = array<i32>} : memref<8x1024xf32, #tpu.memory_space<vmem>>, vector<8x1024xf32>,
    } else {
    }
    %c0 = arith.constant 0 : index
    %c0_1 = arith.constant 0 : index
    %3 = vector.load %arg6[%c0, %c0_1] : memref<8x1024xf32, #tpu.memory_space<vmem>>, vector<8x1024xf32>
    %4 = arith.truncf %3 : vector<8x1024xf32> to vector<8x1024xbf16>
    %c0_2 = arith.constant 0 : index
    %c0_3 = arith.constant 0 : index
    %c0_4 = arith.constant 0 : index
    %5 = vector.load %arg2[%c0_2, %c0_3, %c0_4] : memref<1x1024x1024xbf16, #tpu.memory_space<vmem>>, vector<1x1024x1024xbf16>
    %6 = vector.shape_cast %5 : vector<1x1024x1024xbf16> to vector<1024x1024xbf16>
    %cst = arith.constant dense<0.000000e+00> : vector<8x1024xf32>
    %7 = tpu.matmul %4, %6, %cst {dimension_numbers = #tpu.dot_dimension_numbers<[1], [0], [0], [1], [0, 0, 1, 1], [], []>} : vector<8x1024xbf16>, vector<1024x1024xbf16>, vector<8x1024xf32> -> vector<8x1024xf32>
    %c0_5 = arith.constant 0 : index
    %c0_6 = arith.constant 0 : index
    %c0_7 = arith.constant 0 : index
    %8 = vector.load %arg3[%c0_5, %c0_6, %c0_7] : memref<1x1x1024xf32, #tpu.memory_space<vmem>>, vector<1x1x1024xf32>
    %9 = vector.shape_cast %8 : vector<1x1x1024xf32> to vector<1x1024xf32>
    %10 = vector.broadcast %9 : vector<1x1024xf32> to vector<8x1024xf32>
    %11 = arith.mulf %7, %10 : vector<8x1024xf32>
    %c0_8 = arith.constant 0 : index
    %c0_9 = arith.constant 0 : index
    %c0_10 = arith.constant 0 : index
    %12 = vector.load %arg4[%c0_8, %c0_9, %c0_10] : memref<1x1x1024xf32, #tpu.memory_space<vmem>>, vector<1x1x1024xf32>
    %13 = vector.shape_cast %12 : vector<1x1x1024xf32> to vector<1x1024xf32>
    %14 = vector.broadcast %13 : vector<1x1024xf32> to vector<8x1024xf32>
    %15 = arith.addf %11, %14 : vector<8x1024xf32>
    %c10_i32 = arith.constant 10 : i32
    %16 = arith.cmpi slt, %arg0, %c10_i32 : i32
    %17 = arith.extui %16 : i1 to i32
    %c0_i32_11 = arith.constant 0 : i32
    %18 = arith.cmpi ne, %17, %c0_i32_11 : i32
    scf.if %18 {
      %cst_14 = arith.constant 0.000000e+00 : f32
      %22 = vector.broadcast %cst_14 : f32 to vector<8x1024xf32>
      %23 = arith.maximumf %15, %22 : vector<8x1024xf32>
      %c0_15 = arith.constant 0 : index
      %c0_16 = arith.constant 0 : index
      %24 = vector.load %arg6[%c0_15, %c0_16] : memref<8x1024xf32, #tpu.memory_space<vmem>>, vector<8x1024xf32>
      tpu.vector_store %arg6[%c0_15, %c0_16], %23 {strides = array<i32>} : memref<8x1024xf32, #tpu.memory_space<vmem>>, vector<8x1024xf32>,
    } else {
    }
    %c10_i32_12 = arith.constant 10 : i32
    %19 = arith.cmpi eq, %arg0, %c10_i32_12 : i32
    %20 = arith.extui %19 : i1 to i32
    %c0_i32_13 = arith.constant 0 : i32
    %21 = arith.cmpi ne, %20, %c0_i32_13 : i32
    scf.if %21 {
      %c0_14 = arith.constant 0 : index
      %c0_15 = arith.constant 0 : index
      %22 = vector.load %arg5[%c0_14, %c0_15] : memref<8x1024xf32, #tpu.memory_space<vmem>>, vector<8x1024xf32>
      tpu.vector_store %arg5[%c0_14, %c0_15], %15 {strides = array<i32>} : memref<8x1024xf32, #tpu.memory_space<vmem>>, vector<8x1024xf32>,
    } else {
    }
    return
  }
  func.func @transform_0(%arg0: i32) -> (i32, i32) {
    %c0_i32 = arith.constant 0 : i32
    %c0_i32_0 = arith.constant 0 : i32
    %c0_i32_1 = arith.constant 0 : i32
    return %c0_i32, %c0_i32_0 : i32, i32
  }
  func.func @transform_1(%arg0: i32) -> (i32, i32, i32) {
    %c0_i32 = arith.constant 0 : i32
    %c0_i32_0 = arith.constant 0 : i32
    %c0_i32_1 = arith.constant 0 : i32
    return %arg0, %c0_i32, %c0_i32_0 : i32, i32, i32
  }
  func.func @transform_2(%arg0: i32) -> (i32, i32, i32) {
    %c0_i32 = arith.constant 0 : i32
    %c0_i32_0 = arith.constant 0 : i32
    %c0_i32_1 = arith.constant 0 : i32
    return %arg0, %c0_i32, %c0_i32_0 : i32, i32, i32
  }
  func.func @transform_3(%arg0: i32) -> (i32, i32, i32) {
    %c0_i32 = arith.constant 0 : i32
    %c0_i32_0 = arith.constant 0 : i32
    %c0_i32_1 = arith.constant 0 : i32
    return %arg0, %c0_i32, %c0_i32_0 : i32, i32, i32
  }
  func.func @transform_4(%arg0: i32) -> (i32, i32) {
    %c0_i32 = arith.constant 0 : i32
    %c0_i32_0 = arith.constant 0 : i32
    %c0_i32_1 = arith.constant 0 : i32
    return %c0_i32, %c0_i32_0 : i32, i32
  }
}

</mosaic_0001>

<bundles_post_ra>
// kernel: encoder9_forward.1
= control target key start
LH: loop header
LB: loop body
LE: loop exit
PB: predicated region body
PF: predicated region fallthrough
CT: control target
= control target key end

     0   :  { %9 = vsyncpa [#allocation4], 0  ;;  %s5835_s0 = inlined_call_operand.vmem [shape: f32[8,1024], index: 0, kind: input, shape index: {}]   ;;  %s5836_s1 = inlined_call_operand.hbm [shape: bf16[11,1024,1024], index: 1, kind: input, shape index: {}]   ;;  %s5837_s2 = inlined_call_operand.hbm [shape: f32[11,1,1024], index: 2, kind: input, shape index: {}]   ;;  %s5838_s3 = inlined_call_operand.hbm [shape: f32[11,1,1024], index: 3, kind: input, shape index: {}]   ;;  %s5839_s4 = inlined_call_operand.vmem [shape: f32[8,1024], index: 4, kind: output, shape index: {}]  }
   0x1   :  { %11 = vsyncpa [#allocation4 + $0x1], 0 }
   0x2   :  { %12 = vsyncpa [#allocation6], 0 }
   0x3   :  { %14 = vsyncpa [#allocation6 + $0x1], 0  ;;  %s4997_s15 = smov 0   ;;  %s4999_s16 = smov 0  }
   0x4   :  { %s5001_s17 = smov 0   ;;  %s5003_s18 = smov 0  }
   0x5 LB: > { %s5016_s19 = sadd.s32 4294967295, %s4965_s18   ;;  %s5019_s20 = sadd.s32 1, %s4965_s18   ;;  %s4965_s18 = sphi %s5003_s18, %s5850_s18   ;;  %s4961_s17 = sphi %s5001_s17, %s5849_s17   ;;  %s4957_s16 = sphi %s4999_s16, %s5848_s16   ;;  %s4953_s15 = sphi %s4997_s15, %s5847_s15  }
   0x6   : > { %s45_s21 = ssub.s32 %s4965_s18, %s5019_s20  ;;  %s48_s22 = sadd.s32 1, %s4961_s17 }
   0x7   : > { %p46_p0 = scmp.eq.s32.totalorder %s45_s21, 0  ;;  %p55_p1 = scmp.ne.s32.totalorder %s4961_s17, %s4957_s16 }
   0x8   : > { %p56_p2 = scmp.eq.s32.totalorder %s4965_s18, 0  ;;  %p61_p3 = scmp.ne.s32.totalorder %s4957_s16, %s4953_s15 }
   0x9   : > { %s5029_s23 = scalar_select %p46_p0, %s4961_s17, %s48_s22  }
   0xa   : > { %p57_p4 = por %p56_p2, %p55_p1  ;;  %p62_p5 = scmp.eq.s32.totalorder %s5016_s19, 0 }
   0xb   : > { %p4806_p6 = scmp.lt.s32.totalorder %s4965_s18, 11  ;;  %s5038_s25 = sand.u32 1, %s4961_s17  }
   0xc   : > { %p5033_p7 = por %p62_p5, %p61_p3  ;;  %s182_s27 = sand.u32 1, %s4965_s18  }
   0xd   : > { %p5040_p8 = pnand %p4806_p6, %p57_p4  ;;  %s4260_s28 = sshll.u32 %s5038_s25, 3 }
   0xe   : > { %s5841_s24 = scalar_select %p5033_p7, 1, 0 }
   0xf   : > { %s4788_s29 = sshll.u32 %s4965_s18, 7  ;;  %s186_s30 = scalar_lea.vmem [#allocation5], %s4260_s28 }
  0x10   : > { %s194_s5 = sshll.u32 %s186_s30, 4  ;;  %s192_s8 = scalar_lea.hbm %s5837_s2, %s4788_s29  ;;  %s195_s5 = int_to_ptr.vmem [resolvable:$true] %s194_s5 }
  0x11   : > { %s5054_s9 = scalar_lea.sflag [#allocation6], %s182_s27  ;;  %s4843_s10 = scalar_lea.hbm %s192_s8, 128 }
  0x12   : > { %p4844_p9 = scmp.ne.s32.totalorder %s192_s8, %s4843_s10  ;;  %p5058_p10 = pneg %p5040_p8 }
  0x13   : > { %s4848_s14 = scalar_lea.hbm %s5837_s2, 1408  ;;  %p4849_p13 = scmp.lt.s32.totalorder %s192_s8, %s5837_s2 }
  0x14   : > { %p4846_p11 = pnand %p5058_p10, %p4844_p9  ;;  %p4850_p0 = scmp.lt.s32.totalorder %s4848_s14, %s4843_s10 }
  0x16   : > { %p4847_p12 = pneg %p4846_p11  ;;  %p4851_p1 = por %p4850_p0, %p4849_p13 }
  0x18   : > { %p4852_p2 = pnand %p4851_p1, %p4847_p12 }
  0x1a   : > { %4855 = shalt.err (!%p4852_p2)
}
  0x1b   : > { %s4856_s22 = scalar_lea.vmem %s195_s5, 128  ;;  %s4967_s27 = smov [#allocation5]  }
  0x1c   : > { %p4857_p3 = scmp.ne.s32.totalorder %s195_s5, %s4856_s22  ;;  %s4861_s30 = sshll.u32 %s4967_s27, 4  ;;  %s4862_s30 = int_to_ptr.vmem [resolvable:$false] %s4861_s30 }
  0x1d   : > { %s4863_s6 = scalar_lea.vmem %s4862_s30, 256  ;;  %p4864_p6 = scmp.lt.s32.totalorder %s195_s5, %s4862_s30 }
  0x1e   : > { %p4859_p4 = pnand %p4857_p3, %p5058_p10  ;;  %p4865_p9 = scmp.lt.s32.totalorder %s4863_s6, %s4856_s22 }
  0x20   : > { %p4860_p5 = pneg %p4859_p4  ;;  %p4866_p11 = por %p4865_p9, %p4864_p6 }
  0x22   : > { %p4867_p7 = pnand %p4866_p11, %p4860_p5 }
  0x24   : > { %4870 = shalt.err (!%p4867_p7)
}
  0x25   : > { %4802 = dma.hbm_to_vmem [thread:$0]  (!%p5040_p8), %s192_s8, 128, %s195_s5, %s5054_s9  }
  0x26   : > { %s5080_s12 = scalar_lea.hbm %s5838_s3, %s4788_s29  ;;  %p4266_p12 = scmp.ge.s32.totalorder %s4965_s18, 1 }
  0x27   : > { %p218_p13 = scmp.lt.s32.totalorder %s4965_s18, 12  ;;  %s4257_s13 = sshll.u32 %s5038_s25, 12 }
  0x28   : > { %s4787_s15 = sshll.u32 %s4965_s18, 16  ;;  %s165_s21 = scalar_lea.vmem [#allocation3], %s4257_s13 }
  0x29   : > { %p5085_p7 = pnand %p4266_p12, %p218_p13  ;;  %s172_s22 = sshll.u32 %s165_s21, 4  ;;  %s5095_s22 = int_to_ptr.vmem [resolvable:$true] %s172_s22 }
  0x2a   : > { %s5093_s5 = scalar_lea.hbm %s5836_s1, %s4787_s15  ;;  %s162_s29 = scalar_lea.sflag [#allocation4], %s5038_s25 }
  0x2b   : > { %s5844_s14 = scalar_select %p5085_p7, 1, 0 }
  0x2c   : > { %s4871_s8 = scalar_lea.hbm %s5093_s5, 65536  ;;  %s4876_s7 = scalar_lea.hbm %s5836_s1, 720896 }
  0x2d   : > { %p4872_p0 = scmp.ne.s32.totalorder %s5093_s5, %s4871_s8  ;;  %p4877_p3 = scmp.lt.s32.totalorder %s5093_s5, %s5836_s1 }
  0x2e   : > { %p4878_p4 = scmp.lt.s32.totalorder %s4876_s7, %s4871_s8 }
  0x2f   : > { %p4874_p1 = pnand %p4872_p0, %p5058_p10 }
  0x30   : > { %p4879_p5 = por %p4878_p4, %p4877_p3 }
  0x31   : > { %p4875_p2 = pneg %p4874_p1 }
  0x33   : > { %p4880_p6 = pnand %p4879_p5, %p4875_p2 }
  0x35   : > { %4883 = shalt.err (!%p4880_p6)
}
  0x36   : > { %s4884_s15 = scalar_lea.vmem %s5095_s22, 65536  ;;  %s4968_s21 = smov [#allocation3]  }
  0x37   : > { %p4885_p9 = scmp.ne.s32.totalorder %s5095_s22, %s4884_s15  ;;  %s4889_s27 = sshll.u32 %s4968_s21, 4  ;;  %s4890_s27 = int_to_ptr.vmem [resolvable:$false] %s4889_s27 }
  0x38   : > { %s4891_s30 = scalar_lea.vmem %s4890_s27, 131072  ;;  %p4892_p13 = scmp.lt.s32.totalorder %s5095_s22, %s4890_s27 }
  0x39   : > { %p4887_p11 = pnand %p4885_p9, %p5058_p10  ;;  %p4893_p0 = scmp.lt.s32.totalorder %s4891_s30, %s4884_s15 }
  0x3b   : > { %p4888_p12 = pneg %p4887_p11  ;;  %p4894_p1 = por %p4893_p0, %p4892_p13 }
  0x3d   : > { %p4895_p7 = pnand %p4894_p1, %p4888_p12 }
  0x3f   : > { %4898 = shalt.err (!%p4895_p7)
}
  0x40   : > { %s4969_s8 = smov 512   ;;  %s4970_s6 = smov 32  }
  0x41   : > { %4799 = dma.hbm_to_vmem [thread:$0]  (!%p5040_p8), %s5093_s5, 65536, %s5095_s22, %s162_s29, %s4969_s8, %s4969_s8, %s4970_s6  }
  0x42   : > { %s205_s18 = scalar_lea.vmem [#allocation7], %s4260_s28  ;;  %s4899_s10 = scalar_lea.hbm %s5080_s12, 128 }
  0x43   : > { %s213_s7 = sshll.u32 %s205_s18, 4  ;;  %p4900_p7 = scmp.ne.s32.totalorder %s5080_s12, %s4899_s10  ;;  %s214_s7 = int_to_ptr.vmem [resolvable:$true] %s213_s7 }
  0x44   : > { %s4904_s21 = scalar_lea.hbm %s5838_s3, 1408  ;;  %p4905_p4 = scmp.lt.s32.totalorder %s5080_s12, %s5838_s3 }
  0x45   : > { %p4902_p2 = pnand %p4900_p7, %p5058_p10  ;;  %p4906_p5 = scmp.lt.s32.totalorder %s4904_s21, %s4899_s10 }
  0x47   : > { %p4903_p3 = pneg %p4902_p2  ;;  %p4907_p6 = por %p4906_p5, %p4905_p4 }
  0x49   : > { %p4908_p9 = pnand %p4907_p6, %p4903_p3 }
  0x4b   : > { %4911 = shalt.err (!%p4908_p9)
}
  0x4c   : > { %s4912_s25 = scalar_lea.vmem %s214_s7, 128  ;;  %s4971_s28 = smov [#allocation7]  }
  0x4d   : > { %p4913_p11 = scmp.ne.s32.totalorder %s214_s7, %s4912_s25  ;;  %s4917_s22 = sshll.u32 %s4971_s28, 4  ;;  %s4918_s22 = int_to_ptr.vmem [resolvable:$false] %s4917_s22 }
  0x4e   : > { %s4919_s5 = scalar_lea.vmem %s4918_s22, 256  ;;  %p4920_p0 = scmp.lt.s32.totalorder %s214_s7, %s4918_s22 }
  0x4f   : > { %p4915_p12 = pnand %p4913_p11, %p5058_p10  ;;  %p4921_p1 = scmp.lt.s32.totalorder %s4919_s5, %s4912_s25 }
  0x51   : > { %p4916_p13 = pneg %p4915_p12  ;;  %p4922_p7 = por %p4921_p1, %p4920_p0 }
  0x53   : > { %p4923_p2 = pnand %p4922_p7, %p4916_p13 }
  0x55   : > { %4926 = shalt.err (!%p4923_p2)
}
  0x56   : > { %4805 = dma.hbm_to_vmem [thread:$0]  (!%p5040_p8), %s5080_s12, 128, %s214_s7, %s5054_s9  }
  0x57   : > { %p5845_p3 = scmp.ne.s32.totalorder %s5844_s14, 0 }
  0x58   : > { %s224_s11 = sand.u32 (!%p5845_p3), 1, %s4957_s16   ;;  %p5846_p10 = scmp.ne.s32.totalorder (!%p5845_p3), %s5841_s24, 0 }
  0x59   : > { %222 = sbr.rel (%p5845_p3) target bundleno = 847 (0x34f), region = 36  ;;  %s4267_s29 = sshll.u32 (!%p5845_p3), %s224_s11, 12 }
  0x5a   : > { %s225_s8 = scalar_lea.sflag (!%p5845_p3), [#allocation4], %s224_s11  ;;  %s5142_s6 = scalar_lea.vmem (!%p5845_p3), [#allocation3], %s4267_s29 }
  0x5e   : > { %4944 = dma.done.wait (%p5846_p10), %s225_s8, 65536  }
  0x5f   : > { %4946 = vsyncadd (%p5846_p10), %s225_s8, 4294901760  ;;  %s233_s26 = sand.u32 1, %s5016_s19   ;;  %s4268_s18 = sshll.u32 %s224_s11, 3 }
  0x60   : > { %s234_s9 = scalar_lea.sflag [#allocation6], %s233_s26  ;;  %s5149_s12 = scalar_lea.vmem [#allocation5], %s4268_s18 }
  0x61   : > { %4948 = dma.done.wait (%p5846_p10), %s234_s9, 256  }
  0x62   : > { %4950 = vsyncadd (%p5846_p10), %s234_s9, 4294967040  ;;  %s5155_s14 = scalar_lea.vmem [#allocation7], %s4268_s18  ;;  %p4270_p8 = scmp.ne.s32.totalorder %s5016_s19, 0 }
  0x64   : > { %279 = sbr.rel (%p4270_p8) target bundleno = 110 (0x6e), region = 52 }
  0x69   : > { %v280_v0 = vld [vmem:[%s5835_s0] sm:$0xff]  ;;  %v281_v1 = vld [vmem:[%s5835_s0 + $0x8] sm:$0xff]  ;;  %v282_v2 = vld [vmem:[%s5835_s0 + $0x10] sm:$0xff] }
  0x6a   : > { %288 = vst [vmem:[#allocation2 + $0x30] sm:$0xff] %v280_v0  ;;  %289 = vst [vmem:[#allocation2] sm:$0xff] %v281_v1  ;;  %v283_v3 = vld [vmem:[%s5835_s0 + $0x18] sm:$0xff]  ;;  %v284_v4 = vld [vmem:[%s5835_s0 + $0x20] sm:$0xff] }
  0x6b   : > { %290 = vst [vmem:[#allocation2 + $0x18] sm:$0xff] %v282_v2  ;;  %v285_v5 = vld [vmem:[%s5835_s0 + $0x28] sm:$0xff]  ;;  %291 = vst [vmem:[#allocation2 + $0x10] sm:$0xff] %v283_v3  ;;  %v286_v6 = vld [vmem:[%s5835_s0 + $0x30] sm:$0xff] }
  0x6c   : > { %292 = vst [vmem:[#allocation2 + $0x8] sm:$0xff] %v284_v4  ;;  %293 = vst [vmem:[#allocation2 + $0x20] sm:$0xff] %v285_v5  ;;  %v287_v7 = vld [vmem:[%s5835_s0 + $0x38] sm:$0xff] }
  0x6d   : > { %294 = vst [vmem:[#allocation2 + $0x28] sm:$0xff] %v286_v6  ;;  %295 = vst [vmem:[#allocation2 + $0x38] sm:$0xff] %v287_v7 }
  0x6e PF: > { %v368_v8 = vld [vmem:[%s5142_s6 + $0x1c0] sm:$0xff]  ;;  %p4783_p4 = scmp.ge.s32.totalorder %s5016_s19, 10 }
  0x6f   : > { %v372_v9 = vld [vmem:[%s5142_s6 + $0x1e0] sm:$0xff] }
  0x70   : > { %v496_v10 = vld [vmem:[%s5142_s6 + $0x5c0] sm:$0xff]  ;;  %v4328_v11 = vcombine.high %v368_v8, %v372_v9  ;;  %v4327_v13 = vcombine.low %v368_v8, %v372_v9 }
  0x71   : > { %v500_v12 = vld [vmem:[%s5142_s6 + $0x5e0] sm:$0xff] }
  0x72   : > { %v360_v14 = vld [vmem:[%s5142_s6 + $0x180] sm:$0xff]  ;;  %v4456_v16 = vcombine.high %v496_v10, %v500_v12  ;;  %v4455_v17 = vcombine.low %v496_v10, %v500_v12  ;;  %3384 = vmatprep.subr.bf16.mxu0 %v4328_v11  ;;  %v299_v62 = vld [vmem:[#allocation2 + $0x10] sm:$0xff] }
  0x73   : > { %v364_v15 = vld [vmem:[%s5142_s6 + $0x1a0] sm:$0xff]  ;;  %3385 = vmatpush1.bf16.msra.mxu0 %v4327_v13  ;;  %v5214_v3 = vpack.c.bf16 %v299_v62, %v299_v62 }
  0x74   : > { %v4320_v18 = vcombine.high %v360_v14, %v364_v15  ;;  %v488_v19 = vld [vmem:[%s5142_s6 + $0x580] sm:$0xff]  ;;  %3425 = vmatprep.subr.bf16.mxu1 %v4456_v16  ;;  %v4319_v26 = vcombine.low %v360_v14, %v364_v15 }
  0x75   : > { %v492_v20 = vld [vmem:[%s5142_s6 + $0x5a0] sm:$0xff]  ;;  %3426 = vmatpush1.bf16.msra.mxu1 %v4455_v17  ;;  %3457 = vmatprep.mubr.bf16.mxu1 %v5214_v3 }
  0x76   : > { %v352_v21 = vld [vmem:[%s5142_s6 + $0x140] sm:$0xff]  ;;  %v4448_v22 = vcombine.high %v488_v19, %v492_v20  ;;  %3386 = vmatprep.subr.bf16.mxu0 %v4320_v18  ;;  %v4447_v27 = vcombine.low %v488_v19, %v492_v20 }
  0x77   : > { %v356_v23 = vld [vmem:[%s5142_s6 + $0x160] sm:$0xff]  ;;  %3387 = vmatpush1.bf16.msra.mxu0 %v4319_v26 }
  0x78   : > { %v480_v24 = vld [vmem:[%s5142_s6 + $0x540] sm:$0xff]  ;;  %v4312_v28 = vcombine.high %v352_v21, %v356_v23  ;;  %3427 = vmatprep.subr.bf16.mxu1 %v4448_v22  ;;  %v4311_v34 = vcombine.low %v352_v21, %v356_v23 }
  0x79   : > { %v484_v25 = vld [vmem:[%s5142_s6 + $0x560] sm:$0xff]  ;;  %3428 = vmatpush1.bf16.msra.mxu1 %v4447_v27 }
  0x7a   : > { %v4440_v29 = vcombine.high %v480_v24, %v484_v25  ;;  %v344_v30 = vld [vmem:[%s5142_s6 + $0x100] sm:$0xff]  ;;  %3388 = vmatprep.subr.bf16.mxu0 %v4312_v28  ;;  %v4439_v35 = vcombine.low %v480_v24, %v484_v25 }
  0x7b   : > { %v348_v31 = vld [vmem:[%s5142_s6 + $0x120] sm:$0xff]  ;;  %3389 = vmatpush1.bf16.msra.mxu0 %v4311_v34 }
  0x7c   : > { %v472_v32 = vld [vmem:[%s5142_s6 + $0x500] sm:$0xff]  ;;  %v4304_v36 = vcombine.high %v344_v30, %v348_v31  ;;  %3429 = vmatprep.subr.bf16.mxu1 %v4440_v29  ;;  %v4303_v42 = vcombine.low %v344_v30, %v348_v31 }
  0x7d   : > { %v476_v33 = vld [vmem:[%s5142_s6 + $0x520] sm:$0xff]  ;;  %3430 = vmatpush1.bf16.msra.mxu1 %v4439_v35 }
  0x7e   : > { %v4432_v37 = vcombine.high %v472_v32, %v476_v33  ;;  %v336_v38 = vld [vmem:[%s5142_s6 + $0xc0] sm:$0xff]  ;;  %3390 = vmatprep.subr.bf16.mxu0 %v4304_v36  ;;  %v4431_v43 = vcombine.low %v472_v32, %v476_v33 }
  0x7f   : > { %v340_v39 = vld [vmem:[%s5142_s6 + $0xe0] sm:$0xff]  ;;  %3391 = vmatpush1.bf16.msra.mxu0 %v4303_v42 }
  0x80   : > { %v464_v40 = vld [vmem:[%s5142_s6 + $0x4c0] sm:$0xff]  ;;  %v4296_v44 = vcombine.high %v336_v38, %v340_v39  ;;  %3431 = vmatprep.subr.bf16.mxu1 %v4432_v37  ;;  %v4295_v50 = vcombine.low %v336_v38, %v340_v39 }
  0x81   : > { %v468_v41 = vld [vmem:[%s5142_s6 + $0x4e0] sm:$0xff]  ;;  %3432 = vmatpush1.bf16.msra.mxu1 %v4431_v43 }
  0x82   : > { %v4424_v45 = vcombine.high %v464_v40, %v468_v41  ;;  %v328_v46 = vld [vmem:[%s5142_s6 + $0x80] sm:$0xff]  ;;  %3392 = vmatprep.subr.bf16.mxu0 %v4296_v44  ;;  %v4423_v51 = vcombine.low %v464_v40, %v468_v41 }
  0x83   : > { %v332_v47 = vld [vmem:[%s5142_s6 + $0xa0] sm:$0xff]  ;;  %3393 = vmatpush1.bf16.msra.mxu0 %v4295_v50 }
  0x84   : > { %v456_v48 = vld [vmem:[%s5142_s6 + $0x480] sm:$0xff]  ;;  %v4288_v52 = vcombine.high %v328_v46, %v332_v47  ;;  %3433 = vmatprep.subr.bf16.mxu1 %v4424_v45  ;;  %v4287_v58 = vcombine.low %v328_v46, %v332_v47 }
  0x85   : > { %v460_v49 = vld [vmem:[%s5142_s6 + $0x4a0] sm:$0xff]  ;;  %3434 = vmatpush1.bf16.msra.mxu1 %v4423_v51 }
  0x86   : > { %v4416_v53 = vcombine.high %v456_v48, %v460_v49  ;;  %v320_v54 = vld [vmem:[%s5142_s6 + $0x40] sm:$0xff]  ;;  %3394 = vmatprep.subr.bf16.mxu0 %v4288_v52  ;;  %v4415_v59 = vcombine.low %v456_v48, %v460_v49 }
  0x87   : > { %v324_v55 = vld [vmem:[%s5142_s6 + $0x60] sm:$0xff]  ;;  %3395 = vmatpush1.bf16.msra.mxu0 %v4287_v58 }
  0x88   : > { %v448_v56 = vld [vmem:[%s5142_s6 + $0x440] sm:$0xff]  ;;  %v4280_v60 = vcombine.high %v320_v54, %v324_v55  ;;  %3435 = vmatprep.subr.bf16.mxu1 %v4416_v53  ;;  %v4279_v6 = vcombine.low %v320_v54, %v324_v55 }
  0x89   : > { %v452_v57 = vld [vmem:[%s5142_s6 + $0x460] sm:$0xff]  ;;  %3436 = vmatpush1.bf16.msra.mxu1 %v4415_v59 }
  0x8a   : > { %v297_v61 = vld [vmem:[#allocation2] sm:$0xff]  ;;  %v4408_v63 = vcombine.high %v448_v56, %v452_v57  ;;  %3396 = vmatprep.subr.bf16.mxu0 %v4280_v60  ;;  %v4407_v7 = vcombine.low %v448_v56, %v452_v57 }
  0x8b   : > { %v312_v0 = vld [vmem:[%s5142_s6] sm:$0xff]  ;;  %v5212_v2 = vpack.c.bf16 %v297_v61, %v297_v61  ;;  %3397 = vmatpush1.bf16.msra.mxu0 %v4279_v6 }
  0x8c   : > { %v316_v1 = vld [vmem:[%s5142_s6 + $0x20] sm:$0xff]  ;;  %3437 = vmatprep.subr.bf16.mxu1 %v4408_v63 }
  0x8d   : > { %v440_v4 = vld [vmem:[%s5142_s6 + $0x400] sm:$0xff]  ;;  %3416 = vmatprep.mubr.bf16.mxu0 %v5212_v2  ;;  %v4272_v8 = vcombine.high %v312_v0, %v316_v1  ;;  %v4271_v14 = vcombine.low %v312_v0, %v316_v1  ;;  %3438 = vmatpush1.bf16.msra.mxu1 %v4407_v7 }
  0x8e   : > { %v444_v5 = vld [vmem:[%s5142_s6 + $0x420] sm:$0xff] }
  0x8f   : > { %v4400_v9 = vcombine.high %v440_v4, %v444_v5  ;;  %v432_v10 = vld [vmem:[%s5142_s6 + $0x3c0] sm:$0xff]  ;;  %3398 = vmatprep.subr.bf16.mxu0 %v4272_v8  ;;  %v4399_v15 = vcombine.low %v440_v4, %v444_v5 }
  0x90   : > { %v436_v11 = vld [vmem:[%s5142_s6 + $0x3e0] sm:$0xff]  ;;  %3399 = vmatpush1.bf16.msra.mxu0 %v4271_v14 }
  0x91   : > { %v560_v12 = vld [vmem:[%s5142_s6 + $0x7c0] sm:$0xff]  ;;  %v4392_v16 = vcombine.high %v432_v10, %v436_v11  ;;  %3439 = vmatprep.subr.bf16.mxu1 %v4400_v9  ;;  %v4391_v22 = vcombine.low %v432_v10, %v436_v11 }
  0x92   : > { %v564_v13 = vld [vmem:[%s5142_s6 + $0x7e0] sm:$0xff]  ;;  %3440 = vmatpush1.bf16.msra.mxu1 %v4399_v15 }
  0x93   : > { %v4520_v17 = vcombine.high %v560_v12, %v564_v13  ;;  %v424_v18 = vld [vmem:[%s5142_s6 + $0x380] sm:$0xff]  ;;  %3400 = vmatprep.subr.bf16.mxu0 %v4392_v16  ;;  %v4519_v23 = vcombine.low %v560_v12, %v564_v13 }
  0x94   : > { %v428_v19 = vld [vmem:[%s5142_s6 + $0x3a0] sm:$0xff]  ;;  %3401 = vmatpush2.bf16.msra.mxu0 %v4391_v22 }
  0x95   : > { %v552_v20 = vld [vmem:[%s5142_s6 + $0x780] sm:$0xff]  ;;  %v4384_v24 = vcombine.high %v424_v18, %v428_v19  ;;  %3441 = vmatprep.subr.bf16.mxu1 %v4520_v17  ;;  %v4383_v30 = vcombine.low %v424_v18, %v428_v19  ;;  %v296_v17 = vld [vmem:[#allocation2 + $0x30] sm:$0xff]  ;;  %v298_v19 = vld [vmem:[#allocation2 + $0x18] sm:$0xff] }
  0x96   : > { %v556_v21 = vld [vmem:[%s5142_s6 + $0x7a0] sm:$0xff]  ;;  %3442 = vmatpush2.bf16.msra.mxu1 %v4519_v23 }
  0x97   : > { %v4512_v25 = vcombine.high %v552_v20, %v556_v21  ;;  %v416_v26 = vld [vmem:[%s5142_s6 + $0x340] sm:$0xff]  ;;  %3402 = vmatprep.subr.bf16.mxu0 %v4384_v24  ;;  %v4511_v31 = vcombine.low %v552_v20, %v556_v21  ;;  %v5258_v24 = vpack.c.bf16 %v296_v17, %v296_v17 }
  0x98   : > { %v420_v27 = vld [vmem:[%s5142_s6 + $0x360] sm:$0xff]  ;;  %3403 = vmatpush2.bf16.msra.mxu0 %v4383_v30  ;;  %v303_v30 = vld [vmem:[#allocation2 + $0x38] sm:$0xff] }
  0x99   : > { %v544_v28 = vld [vmem:[%s5142_s6 + $0x740] sm:$0xff]  ;;  %v4376_v32 = vcombine.high %v416_v26, %v420_v27  ;;  %3443 = vmatprep.subr.bf16.mxu1 %v4512_v25  ;;  %v4375_v38 = vcombine.low %v416_v26, %v420_v27 }
  0x9a   : > { %v548_v29 = vld [vmem:[%s5142_s6 + $0x760] sm:$0xff]  ;;  %3444 = vmatpush2.bf16.msra.mxu1 %v4511_v31 }
  0x9b   : > { %v4504_v33 = vcombine.high %v544_v28, %v548_v29  ;;  %v408_v34 = vld [vmem:[%s5142_s6 + $0x300] sm:$0xff]  ;;  %3404 = vmatprep.subr.bf16.mxu0 %v4376_v32  ;;  %v4503_v39 = vcombine.low %v544_v28, %v548_v29  ;;  %v5262_v28 = vpack.c.bf16 %v298_v19, %v298_v19 }
  0x9c   : > { %v412_v35 = vld [vmem:[%s5142_s6 + $0x320] sm:$0xff]  ;;  %3405 = vmatpush2.bf16.msra.mxu0 %v4375_v38 }
  0x9d   : > { %v536_v36 = vld [vmem:[%s5142_s6 + $0x700] sm:$0xff]  ;;  %v4368_v40 = vcombine.high %v408_v34, %v412_v35  ;;  %3445 = vmatprep.subr.bf16.mxu1 %v4504_v33  ;;  %v4367_v46 = vcombine.low %v408_v34, %v412_v35 }
  0x9e   : > { %v540_v37 = vld [vmem:[%s5142_s6 + $0x720] sm:$0xff]  ;;  %3446 = vmatpush2.bf16.msra.mxu1 %v4503_v39  ;;  %v5271_v39 = vpack.c.bf16 %v303_v30, %v303_v30 }
  0x9f   : > { %v4496_v41 = vcombine.high %v536_v36, %v540_v37  ;;  %v400_v42 = vld [vmem:[%s5142_s6 + $0x2c0] sm:$0xff]  ;;  %3406 = vmatprep.subr.bf16.mxu0 %v4368_v40  ;;  %v4495_v47 = vcombine.low %v536_v36, %v540_v37 }
  0xa0   : > { %v404_v43 = vld [vmem:[%s5142_s6 + $0x2e0] sm:$0xff]  ;;  %3407 = vmatpush2.bf16.msra.mxu0 %v4367_v46 }
  0xa1   : > { %v528_v44 = vld [vmem:[%s5142_s6 + $0x6c0] sm:$0xff]  ;;  %v4360_v48 = vcombine.high %v400_v42, %v404_v43  ;;  %3447 = vmatprep.subr.bf16.mxu1 %v4496_v41  ;;  %v4359_v54 = vcombine.low %v400_v42, %v404_v43 }
  0xa2   : > { %v532_v45 = vld [vmem:[%s5142_s6 + $0x6e0] sm:$0xff]  ;;  %3448 = vmatpush2.bf16.msra.mxu1 %v4495_v47 }
  0xa3   : > { %v4488_v49 = vcombine.high %v528_v44, %v532_v45  ;;  %v392_v50 = vld [vmem:[%s5142_s6 + $0x280] sm:$0xff]  ;;  %3408 = vmatprep.subr.bf16.mxu0 %v4360_v48  ;;  %v4487_v55 = vcombine.low %v528_v44, %v532_v45 }
  0xa4   : > { %v396_v51 = vld [vmem:[%s5142_s6 + $0x2a0] sm:$0xff]  ;;  %3409 = vmatpush2.bf16.msra.mxu0 %v4359_v54 }
  0xa5   : > { %v520_v52 = vld [vmem:[%s5142_s6 + $0x680] sm:$0xff]  ;;  %v4352_v56 = vcombine.high %v392_v50, %v396_v51  ;;  %3449 = vmatprep.subr.bf16.mxu1 %v4488_v49  ;;  %v4351_v62 = vcombine.low %v392_v50, %v396_v51 }
  0xa6   : > { %v524_v53 = vld [vmem:[%s5142_s6 + $0x6a0] sm:$0xff]  ;;  %3450 = vmatpush2.bf16.msra.mxu1 %v4487_v55 }
  0xa7   : > { %v4480_v57 = vcombine.high %v520_v52, %v524_v53  ;;  %v384_v58 = vld [vmem:[%s5142_s6 + $0x240] sm:$0xff]  ;;  %3410 = vmatprep.subr.bf16.mxu0 %v4352_v56  ;;  %v4479_v63 = vcombine.low %v520_v52, %v524_v53 }
  0xa8   : > { %v388_v59 = vld [vmem:[%s5142_s6 + $0x260] sm:$0xff]  ;;  %3411 = vmatpush2.bf16.msra.mxu0 %v4351_v62 }
  0xa9   : > { %v512_v60 = vld [vmem:[%s5142_s6 + $0x640] sm:$0xff]  ;;  %v4344_v0 = vcombine.high %v384_v58, %v388_v59  ;;  %3451 = vmatprep.subr.bf16.mxu1 %v4480_v57  ;;  %v4343_v8 = vcombine.low %v384_v58, %v388_v59 }
  0xaa   : > { %v516_v61 = vld [vmem:[%s5142_s6 + $0x660] sm:$0xff]  ;;  %3452 = vmatpush2.bf16.msra.mxu1 %v4479_v63 }
  0xab   : > { %v4472_v1 = vcombine.high %v512_v60, %v516_v61  ;;  %v376_v4 = vld [vmem:[%s5142_s6 + $0x200] sm:$0xff]  ;;  %3412 = vmatprep.subr.bf16.mxu0 %v4344_v0  ;;  %v4471_v9 = vcombine.low %v512_v60, %v516_v61 }
  0xac   : > { %v380_v5 = vld [vmem:[%s5142_s6 + $0x220] sm:$0xff]  ;;  %3413 = vmatpush2.bf16.msra.mxu0 %v4343_v8 }
  0xad   : > { %v504_v6 = vld [vmem:[%s5142_s6 + $0x600] sm:$0xff]  ;;  %v4336_v10 = vcombine.high %v376_v4, %v380_v5  ;;  %3453 = vmatprep.subr.bf16.mxu1 %v4472_v1  ;;  %v4335_v16 = vcombine.low %v376_v4, %v380_v5 }
  0xae   : > { %v508_v7 = vld [vmem:[%s5142_s6 + $0x620] sm:$0xff]  ;;  %3454 = vmatpush2.bf16.msra.mxu1 %v4471_v9 }
  0xaf   : > { %v4464_v11 = vcombine.high %v504_v6, %v508_v7  ;;  %v624_v12 = vld [vmem:[%s5142_s6 + $0x9c0] sm:$0xff]  ;;  %3414 = vmatprep.subr.bf16.mxu0 %v4336_v10  ;;  %v4463_v18 = vcombine.low %v504_v6, %v508_v7 }
  0xb0   : > { %v628_v13 = vld [vmem:[%s5142_s6 + $0x9e0] sm:$0xff]  ;;  %3415 = vmatpush2.bf16.msra.mxu0 %v4335_v16 }
  0xb1   : > { %v752_v14 = vld [vmem:[%s5142_s6 + $0xdc0] sm:$0xff]  ;;  %v4584_v20 = vcombine.high %v624_v12, %v628_v13  ;;  %3455 = vmatprep.subr.bf16.mxu1 %v4464_v11  ;;  %v4583_v29 = vcombine.low %v624_v12, %v628_v13 }
  0xb2   : > { %v756_v15 = vld [vmem:[%s5142_s6 + $0xde0] sm:$0xff]  ;;  %3456 = vmatpush2.bf16.msra.mxu1 %v4463_v18 }
  0xb3   : > { %v4712_v21 = vcombine.high %v752_v14, %v756_v15  ;;  %v616_v22 = vld [vmem:[%s5142_s6 + $0x980] sm:$0xff]  ;;  %3466 = vmatprep.subr.bf16.mxu0 %v4584_v20  ;;  %v4711_v31 = vcombine.low %v752_v14, %v756_v15  ;;  %3417 = vmatmul.mubr.bf16.vlgmr.msra.gmra.mxu0 %v5258_v24 }
  0xb4   : > { %v620_v23 = vld [vmem:[%s5142_s6 + $0x9a0] sm:$0xff]  ;;  %3467 = vmatpush1.bf16.msra.mxu0 %v4583_v29 }
  0xb5   : > { %v744_v25 = vld [vmem:[%s5142_s6 + $0xd80] sm:$0xff]  ;;  %v4576_v32 = vcombine.high %v616_v22, %v620_v23  ;;  %3507 = vmatprep.subr.bf16.mxu1 %v4712_v21  ;;  %3458 = vmatmul.mubr.bf16.vlgmr.msra.gmra.mxu1 %v5262_v28  ;;  %v4575_v40 = vcombine.low %v616_v22, %v620_v23 }
  0xb6   : > { %v748_v26 = vld [vmem:[%s5142_s6 + $0xda0] sm:$0xff]  ;;  %3508 = vmatpush1.bf16.msra.mxu1 %v4711_v31  ;;  %3539 = vmatprep.mubr.bf16.mxu1 %v5271_v39 }
  0xb7   : > { %v301_v27 = vld [vmem:[#allocation2 + $0x20] sm:$0xff]  ;;  %v4704_v33 = vcombine.high %v744_v25, %v748_v26  ;;  %3468 = vmatprep.subr.bf16.mxu0 %v4576_v32  ;;  %v4703_v41 = vcombine.low %v744_v25, %v748_v26 }
  0xb8   : > { %v608_v34 = vld [vmem:[%s5142_s6 + $0x940] sm:$0xff]  ;;  %v5266_v36 = vpack.c.bf16 %v301_v27, %v301_v27  ;;  %3469 = vmatpush1.bf16.msra.mxu0 %v4575_v40 }
  0xb9   : > { %v612_v35 = vld [vmem:[%s5142_s6 + $0x960] sm:$0xff]  ;;  %3509 = vmatprep.subr.bf16.mxu1 %v4704_v33 }
  0xba   : > { %v736_v37 = vld [vmem:[%s5142_s6 + $0xd40] sm:$0xff]  ;;  %v4568_v42 = vcombine.high %v608_v34, %v612_v35  ;;  %3498 = vmatprep.mubr.bf16.mxu0 %v5266_v36  ;;  %v4567_v48 = vcombine.low %v608_v34, %v612_v35  ;;  %3510 = vmatpush1.bf16.msra.mxu1 %v4703_v41 }
  0xbb   : > { %v740_v38 = vld [vmem:[%s5142_s6 + $0xd60] sm:$0xff] }
  0xbc   : > { %v4696_v43 = vcombine.high %v736_v37, %v740_v38  ;;  %v600_v44 = vld [vmem:[%s5142_s6 + $0x900] sm:$0xff]  ;;  %3470 = vmatprep.subr.bf16.mxu0 %v4568_v42  ;;  %v4695_v49 = vcombine.low %v736_v37, %v740_v38 }
  0xbd   : > { %v604_v45 = vld [vmem:[%s5142_s6 + $0x920] sm:$0xff]  ;;  %3471 = vmatpush1.bf16.msra.mxu0 %v4567_v48 }
  0xbe   : > { %v728_v46 = vld [vmem:[%s5142_s6 + $0xd00] sm:$0xff]  ;;  %v4560_v50 = vcombine.high %v600_v44, %v604_v45  ;;  %3511 = vmatprep.subr.bf16.mxu1 %v4696_v43  ;;  %v4559_v56 = vcombine.low %v600_v44, %v604_v45 }
  0xbf   : > { %v732_v47 = vld [vmem:[%s5142_s6 + $0xd20] sm:$0xff]  ;;  %3512 = vmatpush1.bf16.msra.mxu1 %v4695_v49 }
  0xc0   : > { %v4688_v51 = vcombine.high %v728_v46, %v732_v47  ;;  %v592_v52 = vld [vmem:[%s5142_s6 + $0x8c0] sm:$0xff]  ;;  %3472 = vmatprep.subr.bf16.mxu0 %v4560_v50  ;;  %v4687_v57 = vcombine.low %v728_v46, %v732_v47 }
  0xc1   : > { %v596_v53 = vld [vmem:[%s5142_s6 + $0x8e0] sm:$0xff]  ;;  %3473 = vmatpush1.bf16.msra.mxu0 %v4559_v56 }
  0xc2   : > { %v720_v54 = vld [vmem:[%s5142_s6 + $0xcc0] sm:$0xff]  ;;  %v4552_v58 = vcombine.high %v592_v52, %v596_v53  ;;  %3513 = vmatprep.subr.bf16.mxu1 %v4688_v51  ;;  %v4551_v0 = vcombine.low %v592_v52, %v596_v53 }
  0xc3   : > { %v724_v55 = vld [vmem:[%s5142_s6 + $0xce0] sm:$0xff]  ;;  %3514 = vmatpush1.bf16.msra.mxu1 %v4687_v57 }
  0xc4   : > { %v4680_v59 = vcombine.high %v720_v54, %v724_v55  ;;  %v584_v60 = vld [vmem:[%s5142_s6 + $0x880] sm:$0xff]  ;;  %3474 = vmatprep.subr.bf16.mxu0 %v4552_v58  ;;  %v4679_v1 = vcombine.low %v720_v54, %v724_v55 }
  0xc5   : > { %v588_v61 = vld [vmem:[%s5142_s6 + $0x8a0] sm:$0xff]  ;;  %3475 = vmatpush1.bf16.msra.mxu0 %v4551_v0 }
  0xc6   : > { %v712_v62 = vld [vmem:[%s5142_s6 + $0xc80] sm:$0xff]  ;;  %v4544_v4 = vcombine.high %v584_v60, %v588_v61  ;;  %3515 = vmatprep.subr.bf16.mxu1 %v4680_v59  ;;  %v4543_v10 = vcombine.low %v584_v60, %v588_v61 }
  0xc7   : > { %v716_v63 = vld [vmem:[%s5142_s6 + $0xca0] sm:$0xff]  ;;  %3516 = vmatpush1.bf16.msra.mxu1 %v4679_v1 }
  0xc8   : > { %v4672_v5 = vcombine.high %v712_v62, %v716_v63  ;;  %v576_v6 = vld [vmem:[%s5142_s6 + $0x840] sm:$0xff]  ;;  %3476 = vmatprep.subr.bf16.mxu0 %v4544_v4  ;;  %v4671_v11 = vcombine.low %v712_v62, %v716_v63 }
  0xc9   : > { %v580_v7 = vld [vmem:[%s5142_s6 + $0x860] sm:$0xff]  ;;  %3477 = vmatpush1.bf16.msra.mxu0 %v4543_v10 }
  0xca   : > { %v704_v8 = vld [vmem:[%s5142_s6 + $0xc40] sm:$0xff]  ;;  %v4536_v12 = vcombine.high %v576_v6, %v580_v7  ;;  %3517 = vmatprep.subr.bf16.mxu1 %v4672_v5  ;;  %v4535_v18 = vcombine.low %v576_v6, %v580_v7 }
  0xcb   : > { %v708_v9 = vld [vmem:[%s5142_s6 + $0xc60] sm:$0xff]  ;;  %3518 = vmatpush1.bf16.msra.mxu1 %v4671_v11 }
  0xcc   : > { %v4664_v13 = vcombine.high %v704_v8, %v708_v9  ;;  %v568_v14 = vld [vmem:[%s5142_s6 + $0x800] sm:$0xff]  ;;  %3478 = vmatprep.subr.bf16.mxu0 %v4536_v12  ;;  %v4663_v19 = vcombine.low %v704_v8, %v708_v9 }
  0xcd   : > { %v572_v15 = vld [vmem:[%s5142_s6 + $0x820] sm:$0xff]  ;;  %3479 = vmatpush1.bf16.msra.mxu0 %v4535_v18 }
  0xce   : > { %v696_v16 = vld [vmem:[%s5142_s6 + $0xc00] sm:$0xff]  ;;  %v4528_v20 = vcombine.high %v568_v14, %v572_v15  ;;  %3519 = vmatprep.subr.bf16.mxu1 %v4664_v13  ;;  %v4527_v27 = vcombine.low %v568_v14, %v572_v15 }
  0xcf   : > { %v700_v17 = vld [vmem:[%s5142_s6 + $0xc20] sm:$0xff]  ;;  %3520 = vmatpush1.bf16.msra.mxu1 %v4663_v19 }
  0xd0   : > { %v4656_v21 = vcombine.high %v696_v16, %v700_v17  ;;  %v688_v22 = vld [vmem:[%s5142_s6 + $0xbc0] sm:$0xff]  ;;  %3480 = vmatprep.subr.bf16.mxu0 %v4528_v20  ;;  %v4655_v29 = vcombine.low %v696_v16, %v700_v17 }
  0xd1   : > { %v692_v23 = vld [vmem:[%s5142_s6 + $0xbe0] sm:$0xff]  ;;  %3481 = vmatpush1.bf16.msra.mxu0 %v4527_v27 }
  0xd2   : > { %v816_v25 = vld [vmem:[%s5142_s6 + $0xfc0] sm:$0xff]  ;;  %v4648_v30 = vcombine.high %v688_v22, %v692_v23  ;;  %3521 = vmatprep.subr.bf16.mxu1 %v4656_v21  ;;  %v4647_v37 = vcombine.low %v688_v22, %v692_v23 }
  0xd3   : > { %v820_v26 = vld [vmem:[%s5142_s6 + $0xfe0] sm:$0xff]  ;;  %3522 = vmatpush1.bf16.msra.mxu1 %v4655_v29 }
  0xd4   : > { %v4776_v31 = vcombine.high %v816_v25, %v820_v26  ;;  %v680_v32 = vld [vmem:[%s5142_s6 + $0xb80] sm:$0xff]  ;;  %3482 = vmatprep.subr.bf16.mxu0 %v4648_v30  ;;  %v4775_v38 = vcombine.low %v816_v25, %v820_v26  ;;  %v369_v30 = vld [vmem:[%s5142_s6 + $0x1c8] sm:$0xff] }
  0xd5   : > { %v684_v33 = vld [vmem:[%s5142_s6 + $0xba0] sm:$0xff]  ;;  %3483 = vmatpush2.bf16.msra.mxu0 %v4647_v37 }
  0xd6   : > { %v808_v34 = vld [vmem:[%s5142_s6 + $0xf80] sm:$0xff]  ;;  %v4640_v40 = vcombine.high %v680_v32, %v684_v33  ;;  %3523 = vmatprep.subr.bf16.mxu1 %v4776_v31  ;;  %v4639_v46 = vcombine.low %v680_v32, %v684_v33  ;;  %v373_v31 = vld [vmem:[%s5142_s6 + $0x1e8] sm:$0xff] }
  0xd7   : > { %v812_v35 = vld [vmem:[%s5142_s6 + $0xfa0] sm:$0xff]  ;;  %3524 = vmatpush2.bf16.msra.mxu1 %v4775_v38  ;;  %v497_v32 = vld [vmem:[%s5142_s6 + $0x5c8] sm:$0xff] }
  0xd8   : > { %v4768_v41 = vcombine.high %v808_v34, %v812_v35  ;;  %v672_v42 = vld [vmem:[%s5142_s6 + $0xb40] sm:$0xff]  ;;  %3484 = vmatprep.subr.bf16.mxu0 %v4640_v40  ;;  %v4767_v47 = vcombine.low %v808_v34, %v812_v35  ;;  %v501_v33 = vld [vmem:[%s5142_s6 + $0x5e8] sm:$0xff]  ;;  %v4330_v40 = vcombine.high %v369_v30, %v373_v31 }
  0xd9   : > { %v676_v43 = vld [vmem:[%s5142_s6 + $0xb60] sm:$0xff]  ;;  %3485 = vmatpush2.bf16.msra.mxu0 %v4639_v46  ;;  %v300_v35 = vld [vmem:[#allocation2 + $0x8] sm:$0xff] }
  0xda   : > { %v800_v44 = vld [vmem:[%s5142_s6 + $0xf40] sm:$0xff]  ;;  %v4632_v48 = vcombine.high %v672_v42, %v676_v43  ;;  %3525 = vmatprep.subr.bf16.mxu1 %v4768_v41  ;;  %v4631_v54 = vcombine.low %v672_v42, %v676_v43  ;;  %v302_v38 = vld [vmem:[#allocation2 + $0x28] sm:$0xff]  ;;  %v4458_v41 = vcombine.high %v497_v32, %v501_v33 }
  0xdb   : > { %v804_v45 = vld [vmem:[%s5142_s6 + $0xf60] sm:$0xff]  ;;  %3526 = vmatpush2.bf16.msra.mxu1 %v4767_v47  ;;  %v361_v42 = vld [vmem:[%s5142_s6 + $0x188] sm:$0xff]  ;;  %v5338_v47 = vpack.c.bf16 %v302_v38, %v302_v38 }
  0xdc   : > { %v4760_v49 = vcombine.high %v800_v44, %v804_v45  ;;  %v664_v50 = vld [vmem:[%s5142_s6 + $0xb00] sm:$0xff]  ;;  %3486 = vmatprep.subr.bf16.mxu0 %v4632_v48  ;;  %v4759_v55 = vcombine.low %v800_v44, %v804_v45  ;;  %v365_v43 = vld [vmem:[%s5142_s6 + $0x1a8] sm:$0xff]  ;;  %v5334_v44 = vpack.c.bf16 %v300_v35, %v300_v35  ;;  %v4329_v48 = vcombine.low %v369_v30, %v373_v31 }
  0xdd   : > { %v668_v51 = vld [vmem:[%s5142_s6 + $0xb20] sm:$0xff]  ;;  %3487 = vmatpush2.bf16.msra.mxu0 %v4631_v54  ;;  %v489_v45 = vld [vmem:[%s5142_s6 + $0x588] sm:$0xff] }
  0xde   : > { %v792_v52 = vld [vmem:[%s5142_s6 + $0xf00] sm:$0xff]  ;;  %v4624_v56 = vcombine.high %v664_v50, %v668_v51  ;;  %3527 = vmatprep.subr.bf16.mxu1 %v4760_v49  ;;  %v4623_v62 = vcombine.low %v664_v50, %v668_v51  ;;  %v493_v46 = vld [vmem:[%s5142_s6 + $0x5a8] sm:$0xff]  ;;  %v4457_v49 = vcombine.low %v497_v32, %v501_v33  ;;  %v4322_v50 = vcombine.high %v361_v42, %v365_v43 }
  0xdf   : > { %v796_v53 = vld [vmem:[%s5142_s6 + $0xf20] sm:$0xff]  ;;  %3528 = vmatpush2.bf16.msra.mxu1 %v4759_v55  ;;  %v4450_v51 = vcombine.high %v489_v45, %v493_v46  ;;  %v481_v54 = vld [vmem:[%s5142_s6 + $0x548] sm:$0xff] }
  0xe0   : > { %v4752_v57 = vcombine.high %v792_v52, %v796_v53  ;;  %v656_v58 = vld [vmem:[%s5142_s6 + $0xac0] sm:$0xff]  ;;  %3488 = vmatprep.subr.bf16.mxu0 %v4624_v56  ;;  %v4751_v63 = vcombine.low %v792_v52, %v796_v53  ;;  %v353_v52 = vld [vmem:[%s5142_s6 + $0x148] sm:$0xff]  ;;  %v4321_v56 = vcombine.low %v361_v42, %v365_v43 }
  0xe1   : > { %v660_v59 = vld [vmem:[%s5142_s6 + $0xae0] sm:$0xff]  ;;  %3489 = vmatpush2.bf16.msra.mxu0 %v4623_v62  ;;  %v357_v53 = vld [vmem:[%s5142_s6 + $0x168] sm:$0xff] }
  0xe2   : > { %v784_v60 = vld [vmem:[%s5142_s6 + $0xec0] sm:$0xff]  ;;  %v4616_v0 = vcombine.high %v656_v58, %v660_v59  ;;  %3529 = vmatprep.subr.bf16.mxu1 %v4752_v57  ;;  %v4615_v8 = vcombine.low %v656_v58, %v660_v59  ;;  %v485_v55 = vld [vmem:[%s5142_s6 + $0x568] sm:$0xff]  ;;  %v4449_v57 = vcombine.low %v489_v45, %v493_v46  ;;  %v4314_v58 = vcombine.high %v353_v52, %v357_v53 }
  0xe3   : > { %v788_v61 = vld [vmem:[%s5142_s6 + $0xee0] sm:$0xff]  ;;  %3530 = vmatpush2.bf16.msra.mxu1 %v4751_v63  ;;  %v4442_v59 = vcombine.high %v481_v54, %v485_v55  ;;  %v473_v62 = vld [vmem:[%s5142_s6 + $0x508] sm:$0xff] }
  0xe4   : > { %v4744_v1 = vcombine.high %v784_v60, %v788_v61  ;;  %v648_v4 = vld [vmem:[%s5142_s6 + $0xa80] sm:$0xff]  ;;  %3490 = vmatprep.subr.bf16.mxu0 %v4616_v0  ;;  %v4743_v9 = vcombine.low %v784_v60, %v788_v61  ;;  %v345_v60 = vld [vmem:[%s5142_s6 + $0x108] sm:$0xff]  ;;  %v4313_v0 = vcombine.low %v353_v52, %v357_v53 }
  0xe5   : > { %v652_v5 = vld [vmem:[%s5142_s6 + $0xaa0] sm:$0xff]  ;;  %3491 = vmatpush2.bf16.msra.mxu0 %v4615_v8  ;;  %v349_v61 = vld [vmem:[%s5142_s6 + $0x128] sm:$0xff] }
  0xe6   : > { %v776_v6 = vld [vmem:[%s5142_s6 + $0xe80] sm:$0xff]  ;;  %v4608_v10 = vcombine.high %v648_v4, %v652_v5  ;;  %3531 = vmatprep.subr.bf16.mxu1 %v4744_v1  ;;  %v4607_v16 = vcombine.low %v648_v4, %v652_v5  ;;  %v477_v63 = vld [vmem:[%s5142_s6 + $0x528] sm:$0xff]  ;;  %v4441_v1 = vcombine.low %v481_v54, %v485_v55  ;;  %v4306_v4 = vcombine.high %v345_v60, %v349_v61 }
  0xe7   : > { %v780_v7 = vld [vmem:[%s5142_s6 + $0xea0] sm:$0xff]  ;;  %3532 = vmatpush2.bf16.msra.mxu1 %v4743_v9  ;;  %v4434_v5 = vcombine.high %v473_v62, %v477_v63  ;;  %v465_v8 = vld [vmem:[%s5142_s6 + $0x4c8] sm:$0xff] }
  0xe8   : > { %v4736_v11 = vcombine.high %v776_v6, %v780_v7  ;;  %v640_v12 = vld [vmem:[%s5142_s6 + $0xa40] sm:$0xff]  ;;  %3492 = vmatprep.subr.bf16.mxu0 %v4608_v10  ;;  %v4735_v17 = vcombine.low %v776_v6, %v780_v7  ;;  %v337_v6 = vld [vmem:[%s5142_s6 + $0xc8] sm:$0xff]  ;;  %v4305_v10 = vcombine.low %v345_v60, %v349_v61 }
  0xe9   : > { %v644_v13 = vld [vmem:[%s5142_s6 + $0xa60] sm:$0xff]  ;;  %3493 = vmatpush2.bf16.msra.mxu0 %v4607_v16  ;;  %v341_v7 = vld [vmem:[%s5142_s6 + $0xe8] sm:$0xff] }
  0xea   : > { %v768_v14 = vld [vmem:[%s5142_s6 + $0xe40] sm:$0xff]  ;;  %v4600_v18 = vcombine.high %v640_v12, %v644_v13  ;;  %3533 = vmatprep.subr.bf16.mxu1 %v4736_v11  ;;  %v4599_v25 = vcombine.low %v640_v12, %v644_v13  ;;  %v469_v9 = vld [vmem:[%s5142_s6 + $0x4e8] sm:$0xff]  ;;  %v4433_v11 = vcombine.low %v473_v62, %v477_v63  ;;  %v4298_v12 = vcombine.high %v337_v6, %v341_v7 }
  0xeb   : > { %v772_v15 = vld [vmem:[%s5142_s6 + $0xe60] sm:$0xff]  ;;  %3534 = vmatpush2.bf16.msra.mxu1 %v4735_v17  ;;  %v4426_v13 = vcombine.high %v465_v8, %v469_v9  ;;  %v457_v16 = vld [vmem:[%s5142_s6 + $0x488] sm:$0xff] }
  0xec   : > { %v4728_v19 = vcombine.high %v768_v14, %v772_v15  ;;  %v632_v20 = vld [vmem:[%s5142_s6 + $0xa00] sm:$0xff]  ;;  %3494 = vmatprep.subr.bf16.mxu0 %v4600_v18  ;;  %v4727_v26 = vcombine.low %v768_v14, %v772_v15  ;;  %v329_v14 = vld [vmem:[%s5142_s6 + $0x88] sm:$0xff]  ;;  %v4297_v18 = vcombine.low %v337_v6, %v341_v7 }
  0xed   : > { %v636_v21 = vld [vmem:[%s5142_s6 + $0xa20] sm:$0xff]  ;;  %3495 = vmatpush2.bf16.msra.mxu0 %v4599_v25  ;;  %v333_v15 = vld [vmem:[%s5142_s6 + $0xa8] sm:$0xff] }
  0xee   : > { %v760_v22 = vld [vmem:[%s5142_s6 + $0xe00] sm:$0xff]  ;;  %v4592_v27 = vcombine.high %v632_v20, %v636_v21  ;;  %3535 = vmatprep.subr.bf16.mxu1 %v4728_v19  ;;  %v4591_v34 = vcombine.low %v632_v20, %v636_v21  ;;  %v461_v17 = vld [vmem:[%s5142_s6 + $0x4a8] sm:$0xff]  ;;  %v4425_v19 = vcombine.low %v465_v8, %v469_v9  ;;  %v4290_v20 = vcombine.high %v329_v14, %v333_v15 }
  0xef   : > { %v764_v23 = vld [vmem:[%s5142_s6 + $0xe20] sm:$0xff]  ;;  %3536 = vmatpush2.bf16.msra.mxu1 %v4727_v26  ;;  %v4418_v21 = vcombine.high %v457_v16, %v461_v17  ;;  %v449_v25 = vld [vmem:[%s5142_s6 + $0x448] sm:$0xff] }
  0xf0   : > { %v4720_v29 = vcombine.high %v760_v22, %v764_v23  ;;  %3496 = vmatprep.subr.bf16.mxu0 %v4592_v27  ;;  %v4719_v37 = vcombine.low %v760_v22, %v764_v23  ;;  %v321_v22 = vld [vmem:[%s5142_s6 + $0x48] sm:$0xff]  ;;  %v4289_v27 = vcombine.low %v329_v14, %v333_v15 }
  0xf1   : > { %3497 = vmatpush2.bf16.msra.mxu0 %v4591_v34  ;;  %v325_v23 = vld [vmem:[%s5142_s6 + $0x68] sm:$0xff] }
  0xf2   : > { %3537 = vmatprep.subr.bf16.mxu1 %v4720_v29  ;;  %3548 = vmatprep.subr.bf16.mxu0 %v4330_v40  ;;  %v453_v26 = vld [vmem:[%s5142_s6 + $0x468] sm:$0xff]  ;;  %v4417_v29 = vcombine.low %v457_v16, %v461_v17  ;;  %v4282_v30 = vcombine.high %v321_v22, %v325_v23 }
  0xf3   : > { %3538 = vmatpush2.bf16.msra.mxu1 %v4719_v37  ;;  %v4410_v31 = vcombine.high %v449_v25, %v453_v26  ;;  %v313_v32 = vld [vmem:[%s5142_s6 + $0x8] sm:$0xff]  ;;  %v4281_v37 = vcombine.low %v321_v22, %v325_v23  ;;  %v4409_v38 = vcombine.low %v449_v25, %v453_v26 }
  0xf4   : > { %3589 = vmatprep.subr.bf16.mxu1 %v4458_v41  ;;  %3499 = vmatmul.mubr.bf16.vlgmr.msra.gmra.mxu0 %v5334_v44  ;;  %v317_v33 = vld [vmem:[%s5142_s6 + $0x28] sm:$0xff] }
  0xf5   : > { %3549 = vmatpush1.bf16.msra.mxu0 %v4329_v48  ;;  %3580 = vmatprep.mubr.bf16.mxu0 %v5212_v2  ;;  %v441_v34 = vld [vmem:[%s5142_s6 + $0x408] sm:$0xff]  ;;  %v4274_v40 = vcombine.high %v313_v32, %v317_v33  ;;  %v4273_v48 = vcombine.low %v313_v32, %v317_v33 }
  0xf6   : > { %3540 = vmatmul.mubr.bf16.vlgmr.msra.gmra.mxu1 %v5338_v47  ;;  %3550 = vmatprep.subr.bf16.mxu0 %v4322_v50  ;;  %v445_v35 = vld [vmem:[%s5142_s6 + $0x428] sm:$0xff] }
  0xf7   : > { %3590 = vmatpush1.bf16.msra.mxu1 %v4457_v49  ;;  %3621 = vmatprep.mubr.bf16.mxu1 %v5214_v3  ;;  %v4402_v41 = vcombine.high %v441_v34, %v445_v35  ;;  %v433_v42 = vld [vmem:[%s5142_s6 + $0x3c8] sm:$0xff]  ;;  %v4401_v49 = vcombine.low %v441_v34, %v445_v35 }
  0xf8   : > { %3591 = vmatprep.subr.bf16.mxu1 %v4450_v51  ;;  %v437_v43 = vld [vmem:[%s5142_s6 + $0x3e8] sm:$0xff] }
  0xf9   : > { %3551 = vmatpush1.bf16.msra.mxu0 %v4321_v56  ;;  %v561_v45 = vld [vmem:[%s5142_s6 + $0x7c8] sm:$0xff]  ;;  %v4394_v50 = vcombine.high %v433_v42, %v437_v43  ;;  %v4393_v56 = vcombine.low %v433_v42, %v437_v43 }
  0xfa   : > { %3552 = vmatprep.subr.bf16.mxu0 %v4314_v58  ;;  %v565_v46 = vld [vmem:[%s5142_s6 + $0x7e8] sm:$0xff] }
  0xfb   : > { %3592 = vmatpush1.bf16.msra.mxu1 %v4449_v57  ;;  %v4522_v51 = vcombine.high %v561_v45, %v565_v46  ;;  %v425_v52 = vld [vmem:[%s5142_s6 + $0x388] sm:$0xff]  ;;  %v4521_v57 = vcombine.low %v561_v45, %v565_v46 }
  0xfc   : > { %3593 = vmatprep.subr.bf16.mxu1 %v4442_v59  ;;  %v429_v53 = vld [vmem:[%s5142_s6 + $0x3a8] sm:$0xff] }
  0xfd   : > { %3553 = vmatpush1.bf16.msra.mxu0 %v4313_v0  ;;  %v553_v54 = vld [vmem:[%s5142_s6 + $0x788] sm:$0xff]  ;;  %v4386_v58 = vcombine.high %v425_v52, %v429_v53  ;;  %v4385_v0 = vcombine.low %v425_v52, %v429_v53 }
  0xfe   : > { %3554 = vmatprep.subr.bf16.mxu0 %v4306_v4  ;;  %v557_v55 = vld [vmem:[%s5142_s6 + $0x7a8] sm:$0xff] }
  0xff   : > { %3594 = vmatpush1.bf16.msra.mxu1 %v4441_v1  ;;  %v4514_v59 = vcombine.high %v553_v54, %v557_v55  ;;  %v417_v60 = vld [vmem:[%s5142_s6 + $0x348] sm:$0xff]  ;;  %v4513_v1 = vcombine.low %v553_v54, %v557_v55 }
 0x100   : > { %3595 = vmatprep.subr.bf16.mxu1 %v4434_v5  ;;  %v421_v61 = vld [vmem:[%s5142_s6 + $0x368] sm:$0xff] }
 0x101   : > { %3555 = vmatpush1.bf16.msra.mxu0 %v4305_v10  ;;  %v545_v62 = vld [vmem:[%s5142_s6 + $0x748] sm:$0xff]  ;;  %v4378_v4 = vcombine.high %v417_v60, %v421_v61  ;;  %v4377_v10 = vcombine.low %v417_v60, %v421_v61 }
 0x102   : > { %3556 = vmatprep.subr.bf16.mxu0 %v4298_v12  ;;  %v549_v63 = vld [vmem:[%s5142_s6 + $0x768] sm:$0xff] }
 0x103   : > { %3596 = vmatpush1.bf16.msra.mxu1 %v4433_v11  ;;  %v4506_v5 = vcombine.high %v545_v62, %v549_v63  ;;  %v409_v6 = vld [vmem:[%s5142_s6 + $0x308] sm:$0xff]  ;;  %v4505_v11 = vcombine.low %v545_v62, %v549_v63 }
 0x104   : > { %3597 = vmatprep.subr.bf16.mxu1 %v4426_v13  ;;  %v413_v7 = vld [vmem:[%s5142_s6 + $0x328] sm:$0xff] }
 0x105   : > { %3557 = vmatpush1.bf16.msra.mxu0 %v4297_v18  ;;  %v537_v8 = vld [vmem:[%s5142_s6 + $0x708] sm:$0xff]  ;;  %v4370_v12 = vcombine.high %v409_v6, %v413_v7  ;;  %v4369_v18 = vcombine.low %v409_v6, %v413_v7 }
 0x106   : > { %3558 = vmatprep.subr.bf16.mxu0 %v4290_v20  ;;  %v541_v9 = vld [vmem:[%s5142_s6 + $0x728] sm:$0xff] }
 0x107   : > { %3598 = vmatpush1.bf16.msra.mxu1 %v4425_v19  ;;  %v4498_v13 = vcombine.high %v537_v8, %v541_v9  ;;  %v401_v14 = vld [vmem:[%s5142_s6 + $0x2c8] sm:$0xff]  ;;  %v4497_v19 = vcombine.low %v537_v8, %v541_v9 }
 0x108   : > { %3599 = vmatprep.subr.bf16.mxu1 %v4418_v21  ;;  %v405_v15 = vld [vmem:[%s5142_s6 + $0x2e8] sm:$0xff] }
 0x109   : > { %3559 = vmatpush1.bf16.msra.mxu0 %v4289_v27  ;;  %v529_v16 = vld [vmem:[%s5142_s6 + $0x6c8] sm:$0xff]  ;;  %v4362_v20 = vcombine.high %v401_v14, %v405_v15  ;;  %v4361_v27 = vcombine.low %v401_v14, %v405_v15 }
 0x10a   : > { %3560 = vmatprep.subr.bf16.mxu0 %v4282_v30  ;;  %v533_v17 = vld [vmem:[%s5142_s6 + $0x6e8] sm:$0xff] }
 0x10b   : > { %3600 = vmatpush1.bf16.msra.mxu1 %v4417_v29  ;;  %v4490_v21 = vcombine.high %v529_v16, %v533_v17  ;;  %v393_v22 = vld [vmem:[%s5142_s6 + $0x288] sm:$0xff]  ;;  %v4489_v29 = vcombine.low %v529_v16, %v533_v17 }
 0x10c   : > { %3601 = vmatprep.subr.bf16.mxu1 %v4410_v31  ;;  %v397_v23 = vld [vmem:[%s5142_s6 + $0x2a8] sm:$0xff] }
 0x10d   : > { %3561 = vmatpush1.bf16.msra.mxu0 %v4281_v37  ;;  %v521_v25 = vld [vmem:[%s5142_s6 + $0x688] sm:$0xff]  ;;  %v4354_v30 = vcombine.high %v393_v22, %v397_v23  ;;  %v4353_v37 = vcombine.low %v393_v22, %v397_v23 }
 0x10e   : > { %3562 = vmatprep.subr.bf16.mxu0 %v4274_v40  ;;  %v525_v26 = vld [vmem:[%s5142_s6 + $0x6a8] sm:$0xff] }
 0x10f   : > { %3602 = vmatpush1.bf16.msra.mxu1 %v4409_v38  ;;  %v4482_v31 = vcombine.high %v521_v25, %v525_v26  ;;  %v385_v32 = vld [vmem:[%s5142_s6 + $0x248] sm:$0xff]  ;;  %v4481_v38 = vcombine.low %v521_v25, %v525_v26 }
 0x110   : > { %3603 = vmatprep.subr.bf16.mxu1 %v4402_v41  ;;  %v389_v33 = vld [vmem:[%s5142_s6 + $0x268] sm:$0xff] }
 0x111   : > { %3563 = vmatpush1.bf16.msra.mxu0 %v4273_v48  ;;  %v513_v34 = vld [vmem:[%s5142_s6 + $0x648] sm:$0xff]  ;;  %v4346_v40 = vcombine.high %v385_v32, %v389_v33  ;;  %v4345_v48 = vcombine.low %v385_v32, %v389_v33 }
 0x112   : > { %3564 = vmatprep.subr.bf16.mxu0 %v4394_v50  ;;  %v517_v35 = vld [vmem:[%s5142_s6 + $0x668] sm:$0xff] }
 0x113   : > { %3604 = vmatpush1.bf16.msra.mxu1 %v4401_v49  ;;  %v4474_v41 = vcombine.high %v513_v34, %v517_v35  ;;  %v377_v42 = vld [vmem:[%s5142_s6 + $0x208] sm:$0xff]  ;;  %v4473_v49 = vcombine.low %v513_v34, %v517_v35 }
 0x114   : > { %3605 = vmatprep.subr.bf16.mxu1 %v4522_v51  ;;  %v381_v43 = vld [vmem:[%s5142_s6 + $0x228] sm:$0xff] }
 0x115   : > { %3565 = vmatpush2.bf16.msra.mxu0 %v4393_v56  ;;  %v505_v45 = vld [vmem:[%s5142_s6 + $0x608] sm:$0xff]  ;;  %v4338_v50 = vcombine.high %v377_v42, %v381_v43  ;;  %v4337_v56 = vcombine.low %v377_v42, %v381_v43 }
 0x116   : > { %3566 = vmatprep.subr.bf16.mxu0 %v4386_v58  ;;  %v509_v46 = vld [vmem:[%s5142_s6 + $0x628] sm:$0xff] }
 0x117   : > { %3606 = vmatpush2.bf16.msra.mxu1 %v4521_v57  ;;  %v4466_v51 = vcombine.high %v505_v45, %v509_v46  ;;  %v625_v52 = vld [vmem:[%s5142_s6 + $0x9c8] sm:$0xff]  ;;  %v4465_v57 = vcombine.low %v505_v45, %v509_v46 }
 0x118   : > { %3607 = vmatprep.subr.bf16.mxu1 %v4514_v59  ;;  %v629_v53 = vld [vmem:[%s5142_s6 + $0x9e8] sm:$0xff] }
 0x119   : > { %3567 = vmatpush2.bf16.msra.mxu0 %v4385_v0  ;;  %v753_v54 = vld [vmem:[%s5142_s6 + $0xdc8] sm:$0xff]  ;;  %v4586_v58 = vcombine.high %v625_v52, %v629_v53  ;;  %v4585_v0 = vcombine.low %v625_v52, %v629_v53 }
 0x11a   : > { %3568 = vmatprep.subr.bf16.mxu0 %v4378_v4  ;;  %v757_v55 = vld [vmem:[%s5142_s6 + $0xde8] sm:$0xff] }
 0x11b   : > { %3608 = vmatpush2.bf16.msra.mxu1 %v4513_v1  ;;  %v4714_v59 = vcombine.high %v753_v54, %v757_v55  ;;  %v617_v60 = vld [vmem:[%s5142_s6 + $0x988] sm:$0xff]  ;;  %v4713_v1 = vcombine.low %v753_v54, %v757_v55 }
 0x11c   : > { %3609 = vmatprep.subr.bf16.mxu1 %v4506_v5  ;;  %v621_v61 = vld [vmem:[%s5142_s6 + $0x9a8] sm:$0xff] }
 0x11d   : > { %3569 = vmatpush2.bf16.msra.mxu0 %v4377_v10  ;;  %v745_v62 = vld [vmem:[%s5142_s6 + $0xd88] sm:$0xff]  ;;  %v4578_v4 = vcombine.high %v617_v60, %v621_v61  ;;  %v4577_v10 = vcombine.low %v617_v60, %v621_v61 }
 0x11e   : > { %3570 = vmatprep.subr.bf16.mxu0 %v4370_v12  ;;  %v749_v63 = vld [vmem:[%s5142_s6 + $0xda8] sm:$0xff] }
 0x11f   : > { %3610 = vmatpush2.bf16.msra.mxu1 %v4505_v11  ;;  %v4706_v5 = vcombine.high %v745_v62, %v749_v63  ;;  %v609_v6 = vld [vmem:[%s5142_s6 + $0x948] sm:$0xff]  ;;  %v4705_v11 = vcombine.low %v745_v62, %v749_v63 }
 0x120   : > { %3611 = vmatprep.subr.bf16.mxu1 %v4498_v13  ;;  %v613_v7 = vld [vmem:[%s5142_s6 + $0x968] sm:$0xff] }
 0x121   : > { %3571 = vmatpush2.bf16.msra.mxu0 %v4369_v18  ;;  %v737_v8 = vld [vmem:[%s5142_s6 + $0xd48] sm:$0xff]  ;;  %v4570_v12 = vcombine.high %v609_v6, %v613_v7  ;;  %v4569_v18 = vcombine.low %v609_v6, %v613_v7 }
 0x122   : > { %3572 = vmatprep.subr.bf16.mxu0 %v4362_v20  ;;  %v741_v9 = vld [vmem:[%s5142_s6 + $0xd68] sm:$0xff] }
 0x123   : > { %3612 = vmatpush2.bf16.msra.mxu1 %v4497_v19  ;;  %v4698_v13 = vcombine.high %v737_v8, %v741_v9  ;;  %v601_v14 = vld [vmem:[%s5142_s6 + $0x908] sm:$0xff]  ;;  %v4697_v19 = vcombine.low %v737_v8, %v741_v9 }
 0x124   : > { %3613 = vmatprep.subr.bf16.mxu1 %v4490_v21  ;;  %v605_v15 = vld [vmem:[%s5142_s6 + $0x928] sm:$0xff] }
 0x125   : > { %3573 = vmatpush2.bf16.msra.mxu0 %v4361_v27  ;;  %v729_v16 = vld [vmem:[%s5142_s6 + $0xd08] sm:$0xff]  ;;  %v4562_v20 = vcombine.high %v601_v14, %v605_v15  ;;  %v4561_v27 = vcombine.low %v601_v14, %v605_v15 }
 0x126   : > { %3574 = vmatprep.subr.bf16.mxu0 %v4354_v30  ;;  %v733_v17 = vld [vmem:[%s5142_s6 + $0xd28] sm:$0xff] }
 0x127   : > { %3614 = vmatpush2.bf16.msra.mxu1 %v4489_v29  ;;  %v4690_v21 = vcombine.high %v729_v16, %v733_v17  ;;  %v593_v22 = vld [vmem:[%s5142_s6 + $0x8c8] sm:$0xff]  ;;  %v4689_v29 = vcombine.low %v729_v16, %v733_v17 }
 0x128   : > { %3615 = vmatprep.subr.bf16.mxu1 %v4482_v31  ;;  %v597_v23 = vld [vmem:[%s5142_s6 + $0x8e8] sm:$0xff] }
 0x129   : > { %3575 = vmatpush2.bf16.msra.mxu0 %v4353_v37  ;;  %v721_v25 = vld [vmem:[%s5142_s6 + $0xcc8] sm:$0xff]  ;;  %v4554_v30 = vcombine.high %v593_v22, %v597_v23  ;;  %v4553_v37 = vcombine.low %v593_v22, %v597_v23 }
 0x12a   : > { %3576 = vmatprep.subr.bf16.mxu0 %v4346_v40  ;;  %v725_v26 = vld [vmem:[%s5142_s6 + $0xce8] sm:$0xff] }
 0x12b   : > { %3616 = vmatpush2.bf16.msra.mxu1 %v4481_v38  ;;  %v4682_v31 = vcombine.high %v721_v25, %v725_v26  ;;  %v585_v32 = vld [vmem:[%s5142_s6 + $0x888] sm:$0xff]  ;;  %v4681_v38 = vcombine.low %v721_v25, %v725_v26 }
 0x12c   : > { %3617 = vmatprep.subr.bf16.mxu1 %v4474_v41  ;;  %v589_v33 = vld [vmem:[%s5142_s6 + $0x8a8] sm:$0xff] }
 0x12d   : > { %3577 = vmatpush2.bf16.msra.mxu0 %v4345_v48  ;;  %v713_v34 = vld [vmem:[%s5142_s6 + $0xc88] sm:$0xff]  ;;  %v4546_v40 = vcombine.high %v585_v32, %v589_v33  ;;  %v4545_v48 = vcombine.low %v585_v32, %v589_v33 }
 0x12e   : > { %3578 = vmatprep.subr.bf16.mxu0 %v4338_v50  ;;  %v717_v35 = vld [vmem:[%s5142_s6 + $0xca8] sm:$0xff] }
 0x12f   : > { %3618 = vmatpush2.bf16.msra.mxu1 %v4473_v49  ;;  %v4674_v41 = vcombine.high %v713_v34, %v717_v35  ;;  %v577_v42 = vld [vmem:[%s5142_s6 + $0x848] sm:$0xff]  ;;  %v4673_v49 = vcombine.low %v713_v34, %v717_v35 }
 0x130   : > { %3619 = vmatprep.subr.bf16.mxu1 %v4466_v51  ;;  %v581_v43 = vld [vmem:[%s5142_s6 + $0x868] sm:$0xff] }
 0x131   : > { %3579 = vmatpush2.bf16.msra.mxu0 %v4337_v56  ;;  %v705_v45 = vld [vmem:[%s5142_s6 + $0xc48] sm:$0xff]  ;;  %v4538_v50 = vcombine.high %v577_v42, %v581_v43  ;;  %v4537_v56 = vcombine.low %v577_v42, %v581_v43 }
 0x132   : > { %3630 = vmatprep.subr.bf16.mxu0 %v4586_v58  ;;  %v709_v46 = vld [vmem:[%s5142_s6 + $0xc68] sm:$0xff] }
 0x133   : > { %3620 = vmatpush2.bf16.msra.mxu1 %v4465_v57  ;;  %v4666_v51 = vcombine.high %v705_v45, %v709_v46  ;;  %v569_v52 = vld [vmem:[%s5142_s6 + $0x808] sm:$0xff]  ;;  %v4665_v57 = vcombine.low %v705_v45, %v709_v46 }
 0x134   : > { %3671 = vmatprep.subr.bf16.mxu1 %v4714_v59  ;;  %3581 = vmatmul.mubr.bf16.vlgmr.msra.gmra.mxu0 %v5258_v24  ;;  %v573_v53 = vld [vmem:[%s5142_s6 + $0x828] sm:$0xff] }
 0x135   : > { %3631 = vmatpush1.bf16.msra.mxu0 %v4585_v0  ;;  %3662 = vmatprep.mubr.bf16.mxu0 %v5266_v36  ;;  %v697_v54 = vld [vmem:[%s5142_s6 + $0xc08] sm:$0xff]  ;;  %v4530_v58 = vcombine.high %v569_v52, %v573_v53  ;;  %v4529_v0 = vcombine.low %v569_v52, %v573_v53 }
 0x136   : > { %3622 = vmatmul.mubr.bf16.vlgmr.msra.gmra.mxu1 %v5262_v28  ;;  %3632 = vmatprep.subr.bf16.mxu0 %v4578_v4  ;;  %v701_v55 = vld [vmem:[%s5142_s6 + $0xc28] sm:$0xff] }
 0x137   : > { %3672 = vmatpush1.bf16.msra.mxu1 %v4713_v1  ;;  %3703 = vmatprep.mubr.bf16.mxu1 %v5271_v39  ;;  %v4658_v59 = vcombine.high %v697_v54, %v701_v55  ;;  %v689_v60 = vld [vmem:[%s5142_s6 + $0xbc8] sm:$0xff]  ;;  %v4657_v1 = vcombine.low %v697_v54, %v701_v55 }
 0x138   : > { %3673 = vmatprep.subr.bf16.mxu1 %v4706_v5  ;;  %v693_v61 = vld [vmem:[%s5142_s6 + $0xbe8] sm:$0xff] }
 0x139   : > { %3633 = vmatpush1.bf16.msra.mxu0 %v4577_v10  ;;  %v817_v62 = vld [vmem:[%s5142_s6 + $0xfc8] sm:$0xff]  ;;  %v4650_v4 = vcombine.high %v689_v60, %v693_v61  ;;  %v4649_v10 = vcombine.low %v689_v60, %v693_v61 }
 0x13a   : > { %3634 = vmatprep.subr.bf16.mxu0 %v4570_v12  ;;  %v821_v63 = vld [vmem:[%s5142_s6 + $0xfe8] sm:$0xff] }
 0x13b   : > { %3674 = vmatpush1.bf16.msra.mxu1 %v4705_v11  ;;  %v4778_v5 = vcombine.high %v817_v62, %v821_v63  ;;  %v681_v6 = vld [vmem:[%s5142_s6 + $0xb88] sm:$0xff]  ;;  %v4777_v11 = vcombine.low %v817_v62, %v821_v63 }
 0x13c   : > { %3675 = vmatprep.subr.bf16.mxu1 %v4698_v13  ;;  %v685_v7 = vld [vmem:[%s5142_s6 + $0xba8] sm:$0xff] }
 0x13d   : > { %3635 = vmatpush1.bf16.msra.mxu0 %v4569_v18  ;;  %v809_v8 = vld [vmem:[%s5142_s6 + $0xf88] sm:$0xff]  ;;  %v4642_v12 = vcombine.high %v681_v6, %v685_v7  ;;  %v4641_v18 = vcombine.low %v681_v6, %v685_v7  ;;  %v370_v6 = vld [vmem:[%s5142_s6 + $0x1d0] sm:$0xff] }
 0x13e   : > { %3636 = vmatprep.subr.bf16.mxu0 %v4562_v20  ;;  %v813_v9 = vld [vmem:[%s5142_s6 + $0xfa8] sm:$0xff]  ;;  %v374_v7 = vld [vmem:[%s5142_s6 + $0x1f0] sm:$0xff] }
 0x13f   : > { %3676 = vmatpush1.bf16.msra.mxu1 %v4697_v19  ;;  %v4770_v13 = vcombine.high %v809_v8, %v813_v9  ;;  %v673_v14 = vld [vmem:[%s5142_s6 + $0xb48] sm:$0xff]  ;;  %v4769_v19 = vcombine.low %v809_v8, %v813_v9  ;;  %v498_v8 = vld [vmem:[%s5142_s6 + $0x5d0] sm:$0xff] }
 0x140   : > { %3677 = vmatprep.subr.bf16.mxu1 %v4690_v21  ;;  %v677_v15 = vld [vmem:[%s5142_s6 + $0xb68] sm:$0xff]  ;;  %v502_v9 = vld [vmem:[%s5142_s6 + $0x5f0] sm:$0xff] }
 0x141   : > { %3637 = vmatpush1.bf16.msra.mxu0 %v4561_v27  ;;  %v801_v16 = vld [vmem:[%s5142_s6 + $0xf48] sm:$0xff]  ;;  %v4634_v20 = vcombine.high %v673_v14, %v677_v15  ;;  %v4633_v27 = vcombine.low %v673_v14, %v677_v15  ;;  %v362_v14 = vld [vmem:[%s5142_s6 + $0x190] sm:$0xff] }
 0x142   : > { %3638 = vmatprep.subr.bf16.mxu0 %v4554_v30  ;;  %v805_v17 = vld [vmem:[%s5142_s6 + $0xf68] sm:$0xff]  ;;  %v366_v15 = vld [vmem:[%s5142_s6 + $0x1b0] sm:$0xff] }
 0x143   : > { %3678 = vmatpush1.bf16.msra.mxu1 %v4689_v29  ;;  %v4762_v21 = vcombine.high %v801_v16, %v805_v17  ;;  %v665_v22 = vld [vmem:[%s5142_s6 + $0xb08] sm:$0xff]  ;;  %v4761_v29 = vcombine.low %v801_v16, %v805_v17  ;;  %v490_v16 = vld [vmem:[%s5142_s6 + $0x590] sm:$0xff] }
 0x144   : > { %3679 = vmatprep.subr.bf16.mxu1 %v4682_v31  ;;  %v669_v23 = vld [vmem:[%s5142_s6 + $0xb28] sm:$0xff]  ;;  %v494_v17 = vld [vmem:[%s5142_s6 + $0x5b0] sm:$0xff] }
 0x145   : > { %3639 = vmatpush1.bf16.msra.mxu0 %v4553_v37  ;;  %v793_v25 = vld [vmem:[%s5142_s6 + $0xf08] sm:$0xff]  ;;  %v4626_v30 = vcombine.high %v665_v22, %v669_v23  ;;  %v4625_v37 = vcombine.low %v665_v22, %v669_v23  ;;  %v354_v22 = vld [vmem:[%s5142_s6 + $0x150] sm:$0xff] }
 0x146   : > { %3640 = vmatprep.subr.bf16.mxu0 %v4546_v40  ;;  %v797_v26 = vld [vmem:[%s5142_s6 + $0xf28] sm:$0xff]  ;;  %v358_v23 = vld [vmem:[%s5142_s6 + $0x170] sm:$0xff] }
 0x147   : > { %3680 = vmatpush1.bf16.msra.mxu1 %v4681_v38  ;;  %v4754_v31 = vcombine.high %v793_v25, %v797_v26  ;;  %v657_v32 = vld [vmem:[%s5142_s6 + $0xac8] sm:$0xff]  ;;  %v4753_v38 = vcombine.low %v793_v25, %v797_v26  ;;  %v482_v26 = vld [vmem:[%s5142_s6 + $0x550] sm:$0xff] }
 0x148   : > { %3681 = vmatprep.subr.bf16.mxu1 %v4674_v41  ;;  %v661_v33 = vld [vmem:[%s5142_s6 + $0xae8] sm:$0xff] }
 0x149   : > { %3641 = vmatpush1.bf16.msra.mxu0 %v4545_v48  ;;  %v785_v34 = vld [vmem:[%s5142_s6 + $0xec8] sm:$0xff]  ;;  %v4618_v40 = vcombine.high %v657_v32, %v661_v33  ;;  %v4617_v48 = vcombine.low %v657_v32, %v661_v33  ;;  %v4451_v33 = vcombine.low %v490_v16, %v494_v17 }
 0x14a   : > { %3642 = vmatprep.subr.bf16.mxu0 %v4538_v50  ;;  %v789_v35 = vld [vmem:[%s5142_s6 + $0xee8] sm:$0xff] }
 0x14b   : > { %3682 = vmatpush1.bf16.msra.mxu1 %v4673_v49  ;;  %v4746_v41 = vcombine.high %v785_v34, %v789_v35  ;;  %v649_v42 = vld [vmem:[%s5142_s6 + $0xa88] sm:$0xff]  ;;  %v4745_v49 = vcombine.low %v785_v34, %v789_v35  ;;  %v4316_v34 = vcombine.high %v354_v22, %v358_v23 }
 0x14c   : > { %3683 = vmatprep.subr.bf16.mxu1 %v4666_v51  ;;  %v653_v43 = vld [vmem:[%s5142_s6 + $0xaa8] sm:$0xff] }
 0x14d   : > { %3643 = vmatpush1.bf16.msra.mxu0 %v4537_v56  ;;  %v777_v45 = vld [vmem:[%s5142_s6 + $0xe88] sm:$0xff]  ;;  %v4610_v50 = vcombine.high %v649_v42, %v653_v43  ;;  %v4609_v56 = vcombine.low %v649_v42, %v653_v43  ;;  %v474_v43 = vld [vmem:[%s5142_s6 + $0x510] sm:$0xff] }
 0x14e   : > { %3644 = vmatprep.subr.bf16.mxu0 %v4530_v58  ;;  %v781_v46 = vld [vmem:[%s5142_s6 + $0xea8] sm:$0xff] }
 0x14f   : > { %3684 = vmatpush1.bf16.msra.mxu1 %v4665_v57  ;;  %v4738_v51 = vcombine.high %v777_v45, %v781_v46  ;;  %v641_v52 = vld [vmem:[%s5142_s6 + $0xa48] sm:$0xff]  ;;  %v4737_v57 = vcombine.low %v777_v45, %v781_v46  ;;  %v478_v45 = vld [vmem:[%s5142_s6 + $0x530] sm:$0xff] }
 0x150   : > { %3685 = vmatprep.subr.bf16.mxu1 %v4658_v59  ;;  %v645_v53 = vld [vmem:[%s5142_s6 + $0xa68] sm:$0xff] }
 0x151   : > { %3645 = vmatpush1.bf16.msra.mxu0 %v4529_v0  ;;  %v769_v54 = vld [vmem:[%s5142_s6 + $0xe48] sm:$0xff]  ;;  %v4602_v58 = vcombine.high %v641_v52, %v645_v53  ;;  %v4601_v0 = vcombine.low %v641_v52, %v645_v53  ;;  %v4436_v53 = vcombine.high %v474_v43, %v478_v45 }
 0x152   : > { %3646 = vmatprep.subr.bf16.mxu0 %v4650_v4  ;;  %v773_v55 = vld [vmem:[%s5142_s6 + $0xe68] sm:$0xff] }
 0x153   : > { %3686 = vmatpush1.bf16.msra.mxu1 %v4657_v1  ;;  %v4730_v59 = vcombine.high %v769_v54, %v773_v55  ;;  %v633_v60 = vld [vmem:[%s5142_s6 + $0xa08] sm:$0xff]  ;;  %v4729_v1 = vcombine.low %v769_v54, %v773_v55  ;;  %v338_v54 = vld [vmem:[%s5142_s6 + $0xd0] sm:$0xff] }
 0x154   : > { %3687 = vmatprep.subr.bf16.mxu1 %v4778_v5  ;;  %v637_v61 = vld [vmem:[%s5142_s6 + $0xa28] sm:$0xff]  ;;  %v342_v55 = vld [vmem:[%s5142_s6 + $0xf0] sm:$0xff] }
 0x155   : > { %3647 = vmatpush2.bf16.msra.mxu0 %v4649_v10  ;;  %v761_v62 = vld [vmem:[%s5142_s6 + $0xe08] sm:$0xff]  ;;  %v4594_v4 = vcombine.high %v633_v60, %v637_v61  ;;  %v4593_v10 = vcombine.low %v633_v60, %v637_v61  ;;  %v4300_v60 = vcombine.high %v338_v54, %v342_v55 }
 0x156   : > { %3648 = vmatprep.subr.bf16.mxu0 %v4642_v12  ;;  %v765_v63 = vld [vmem:[%s5142_s6 + $0xe28] sm:$0xff]  ;;  %v4332_v12 = vcombine.high %v370_v6, %v374_v7 }
 0x157   : > { %3688 = vmatpush2.bf16.msra.mxu1 %v4777_v11  ;;  %v4722_v5 = vcombine.high %v761_v62, %v765_v63  ;;  %v4721_v11 = vcombine.low %v761_v62, %v765_v63  ;;  %v330_v62 = vld [vmem:[%s5142_s6 + $0x90] sm:$0xff] }
 0x158   : > { %3689 = vmatprep.subr.bf16.mxu1 %v4770_v13  ;;  %v4460_v13 = vcombine.high %v498_v8, %v502_v9  ;;  %v334_v63 = vld [vmem:[%s5142_s6 + $0xb0] sm:$0xff] }
 0x159   : > { %3649 = vmatpush2.bf16.msra.mxu0 %v4641_v18  ;;  %v4331_v18 = vcombine.low %v370_v6, %v374_v7  ;;  %v4292_v6 = vcombine.high %v330_v62, %v334_v63 }
 0x15a   : > { %3650 = vmatprep.subr.bf16.mxu0 %v4634_v20  ;;  %v4324_v20 = vcombine.high %v362_v14, %v366_v15 }
 0x15b   : > { %3690 = vmatpush2.bf16.msra.mxu1 %v4769_v19  ;;  %v4459_v19 = vcombine.low %v498_v8, %v502_v9  ;;  %v322_v8 = vld [vmem:[%s5142_s6 + $0x50] sm:$0xff] }
 0x15c   : > { %3691 = vmatprep.subr.bf16.mxu1 %v4762_v21  ;;  %v4452_v21 = vcombine.high %v490_v16, %v494_v17  ;;  %v326_v9 = vld [vmem:[%s5142_s6 + $0x70] sm:$0xff] }
 0x15d   : > { %3651 = vmatpush2.bf16.msra.mxu0 %v4633_v27  ;;  %v486_v27 = vld [vmem:[%s5142_s6 + $0x570] sm:$0xff] }
 0x15e   : > { %3652 = vmatprep.subr.bf16.mxu0 %v4626_v30  ;;  %v4323_v30 = vcombine.low %v362_v14, %v366_v15  ;;  %v4284_v14 = vcombine.high %v322_v8, %v326_v9  ;;  %v314_v16 = vld [vmem:[%s5142_s6 + $0x10] sm:$0xff] }
 0x15f   : > { %3692 = vmatpush2.bf16.msra.mxu1 %v4761_v29  ;;  %v318_v17 = vld [vmem:[%s5142_s6 + $0x30] sm:$0xff] }
 0x160   : > { %3693 = vmatprep.subr.bf16.mxu1 %v4754_v31 }
 0x161   : > { %3653 = vmatpush2.bf16.msra.mxu0 %v4625_v37  ;;  %v4444_v37 = vcombine.high %v482_v26, %v486_v27 }
 0x162   : > { %3654 = vmatprep.subr.bf16.mxu0 %v4618_v40  ;;  %v350_v40 = vld [vmem:[%s5142_s6 + $0x130] sm:$0xff] }
 0x163   : > { %3694 = vmatpush2.bf16.msra.mxu1 %v4753_v38  ;;  %v346_v38 = vld [vmem:[%s5142_s6 + $0x110] sm:$0xff] }
 0x164   : > { %3695 = vmatprep.subr.bf16.mxu1 %v4746_v41 }
 0x165   : > { %3655 = vmatpush2.bf16.msra.mxu0 %v4617_v48  ;;  %v4315_v48 = vcombine.low %v354_v22, %v358_v23  ;;  %v4276_v22 = vcombine.high %v314_v16, %v318_v17 }
 0x166   : > { %3656 = vmatprep.subr.bf16.mxu0 %v4610_v50  ;;  %v4443_v50 = vcombine.low %v482_v26, %v486_v27  ;;  %v438_v26 = vld [vmem:[%s5142_s6 + $0x3f0] sm:$0xff] }
 0x167   : > { %3696 = vmatpush2.bf16.msra.mxu1 %v4745_v49  ;;  %v562_v27 = vld [vmem:[%s5142_s6 + $0x7d0] sm:$0xff] }
 0x168   : > { %3697 = vmatprep.subr.bf16.mxu1 %v4738_v51  ;;  %v4308_v51 = vcombine.high %v346_v38, %v350_v40 }
 0x169   : > { %3657 = vmatpush2.bf16.msra.mxu0 %v4609_v56  ;;  %v466_v56 = vld [vmem:[%s5142_s6 + $0x4d0] sm:$0xff] }
 0x16a   : > { %3658 = vmatprep.subr.bf16.mxu0 %v4602_v58  ;;  %v4307_v58 = vcombine.low %v346_v38, %v350_v40  ;;  %v554_v38 = vld [vmem:[%s5142_s6 + $0x790] sm:$0xff] }
 0x16b   : > { %3698 = vmatpush2.bf16.msra.mxu1 %v4737_v57  ;;  %v470_v57 = vld [vmem:[%s5142_s6 + $0x4f0] sm:$0xff] }
 0x16c   : > { %3699 = vmatprep.subr.bf16.mxu1 %v4730_v59  ;;  %v4435_v59 = vcombine.low %v474_v43, %v478_v45  ;;  %v4428_v61 = vcombine.high %v466_v56, %v470_v57  ;;  %v558_v40 = vld [vmem:[%s5142_s6 + $0x7b0] sm:$0xff] }
 0x16d   : > { %3659 = vmatpush2.bf16.msra.mxu0 %v4601_v0  ;;  %v458_v0 = vld [vmem:[%s5142_s6 + $0x490] sm:$0xff] }
 0x16e   : > { %3660 = vmatprep.subr.bf16.mxu0 %v4594_v4  ;;  %v4299_v4 = vcombine.low %v338_v54, %v342_v55 }
 0x16f   : > { %3700 = vmatpush2.bf16.msra.mxu1 %v4729_v1  ;;  %v462_v1 = vld [vmem:[%s5142_s6 + $0x4b0] sm:$0xff] }
 0x170   : > { %3701 = vmatprep.subr.bf16.mxu1 %v4722_v5  ;;  %v4427_v5 = vcombine.low %v466_v56, %v470_v57  ;;  %v4420_v7 = vcombine.high %v458_v0, %v462_v1  ;;  %v410_v56 = vld [vmem:[%s5142_s6 + $0x310] sm:$0xff] }
 0x171   : > { %3661 = vmatpush2.bf16.msra.mxu0 %v4593_v10  ;;  %v450_v10 = vld [vmem:[%s5142_s6 + $0x450] sm:$0xff] }
 0x172   : > { %3712 = vmatprep.subr.bf16.mxu0 %v4332_v12  ;;  %v4291_v12 = vcombine.low %v330_v62, %v334_v63  ;;  %v414_v57 = vld [vmem:[%s5142_s6 + $0x330] sm:$0xff] }
 0x173   : > { %3702 = vmatpush2.bf16.msra.mxu1 %v4721_v11  ;;  %v3418_v25 = vpop.f32.mrf.mxu0  ;;  %v454_v11 = vld [vmem:[%s5142_s6 + $0x470] sm:$0xff]  ;;  %v4372_v62 = vcombine.high %v410_v56, %v414_v57 }
 0x174   : > { %3753 = vmatprep.subr.bf16.mxu1 %v4460_v13  ;;  %3663 = vmatmul.mubr.bf16.vlgmr.msra.gmra.mxu0 %v5334_v44  ;;  %v4419_v13 = vcombine.low %v458_v0, %v462_v1  ;;  %v4412_v15 = vcombine.high %v450_v10, %v454_v11  ;;  %v402_v0 = vld [vmem:[%s5142_s6 + $0x2d0] sm:$0xff] }
 0x175   : > { %v3459_v29 = vpop.f32.mrf.mxu1  ;;  %3713 = vmatpush1.bf16.msra.mxu0 %v4331_v18  ;;  %v3420_v32 = vpop.f32.mrf.mxu0  ;;  %3744 = vmatprep.mubr.bf16.mxu0 %v5212_v2  ;;  %v442_v18 = vld [vmem:[%s5142_s6 + $0x410] sm:$0xff] }
 0x176   : > { %3704 = vmatmul.mubr.bf16.vlgmr.msra.gmra.mxu1 %v5338_v47  ;;  %v5482_v31 = vadd.f32 %v3459_v29, %v3418_v25  ;;  %3714 = vmatprep.subr.bf16.mxu0 %v4324_v20  ;;  %v4283_v20 = vcombine.low %v322_v8, %v326_v9  ;;  %v434_v25 = vld [vmem:[%s5142_s6 + $0x3d0] sm:$0xff] }
 0x177   : > { %3754 = vmatpush1.bf16.msra.mxu1 %v4459_v19  ;;  %v3461_v35 = vpop.f32.mrf.mxu1  ;;  %v3422_v42 = vpop.f32.mrf.mxu0  ;;  %3785 = vmatprep.mubr.bf16.mxu1 %v5214_v3  ;;  %v446_v19 = vld [vmem:[%s5142_s6 + $0x430] sm:$0xff] }
 0x178   : > { %3755 = vmatprep.subr.bf16.mxu1 %v4452_v21  ;;  %v5487_v41 = vadd.f32 %v3461_v35, %v3420_v32  ;;  %v4411_v21 = vcombine.low %v450_v10, %v454_v11  ;;  %v4404_v23 = vcombine.high %v442_v18, %v446_v19  ;;  %v566_v29 = vld [vmem:[%s5142_s6 + $0x7f0] sm:$0xff]  ;;  %v4403_v32 = vcombine.low %v442_v18, %v446_v19 }
 0x179   : > { %v3463_v46 = vpop.f32.mrf.mxu1  ;;  %3715 = vmatpush1.bf16.msra.mxu0 %v4323_v30  ;;  %v3423_v49 = vpop.f32.mrf.mxu0  ;;  %v4275_v30 = vcombine.low %v314_v16, %v318_v17  ;;  %v426_v35 = vld [vmem:[%s5142_s6 + $0x390] sm:$0xff]  ;;  %v4395_v42 = vcombine.low %v434_v25, %v438_v26  ;;  %v4523_v43 = vcombine.low %v562_v27, %v566_v29 }
 0x17a   : > { %3716 = vmatprep.subr.bf16.mxu0 %v4316_v34  ;;  %v4524_v34 = vcombine.high %v562_v27, %v566_v29  ;;  %v4516_v46 = vcombine.high %v554_v38, %v558_v40  ;;  %v422_v49 = vld [vmem:[%s5142_s6 + $0x370] sm:$0xff] }
 0x17b   : > { %3756 = vmatpush1.bf16.msra.mxu1 %v4451_v33  ;;  %v3464_v52 = vpop.f32.mrf.mxu1  ;;  %v4396_v33 = vcombine.high %v434_v25, %v438_v26  ;;  %v406_v1 = vld [vmem:[%s5142_s6 + $0x2f0] sm:$0xff] }
 0x17c   : > { %3757 = vmatprep.subr.bf16.mxu1 %v4444_v37  ;;  %v430_v37 = vld [vmem:[%s5142_s6 + $0x3b0] sm:$0xff]  ;;  %v4364_v8 = vcombine.high %v402_v0, %v406_v1 }
 0x17d   : > { %3717 = vmatpush1.bf16.msra.mxu0 %v4315_v48  ;;  %v4388_v45 = vcombine.high %v426_v35, %v430_v37  ;;  %v418_v48 = vld [vmem:[%s5142_s6 + $0x350] sm:$0xff]  ;;  %v4387_v52 = vcombine.low %v426_v35, %v430_v37 }
 0x17e   : > { %3718 = vmatprep.subr.bf16.mxu0 %v4308_v51  ;;  %v550_v51 = vld [vmem:[%s5142_s6 + $0x770] sm:$0xff]  ;;  %v4380_v54 = vcombine.high %v418_v48, %v422_v49 }
 0x17f   : > { %3758 = vmatpush1.bf16.msra.mxu1 %v4443_v50  ;;  %v546_v50 = vld [vmem:[%s5142_s6 + $0x750] sm:$0xff] }
 0x180   : > { %3759 = vmatprep.subr.bf16.mxu1 %v4436_v53  ;;  %v4515_v53 = vcombine.low %v554_v38, %v558_v40  ;;  %v4508_v55 = vcombine.high %v546_v50, %v550_v51  ;;  %v394_v10 = vld [vmem:[%s5142_s6 + $0x290] sm:$0xff] }
 0x181   : > { %3719 = vmatpush1.bf16.msra.mxu0 %v4307_v58  ;;  %v538_v58 = vld [vmem:[%s5142_s6 + $0x710] sm:$0xff] }
 0x182   : > { %3720 = vmatprep.subr.bf16.mxu0 %v4300_v60  ;;  %v4379_v60 = vcombine.low %v418_v48, %v422_v49  ;;  %v398_v11 = vld [vmem:[%s5142_s6 + $0x2b0] sm:$0xff] }
 0x183   : > { %3760 = vmatpush1.bf16.msra.mxu1 %v4435_v59  ;;  %v542_v59 = vld [vmem:[%s5142_s6 + $0x730] sm:$0xff]  ;;  %v4356_v16 = vcombine.high %v394_v10, %v398_v11 }
 0x184   : > { %3761 = vmatprep.subr.bf16.mxu1 %v4428_v61  ;;  %v4507_v61 = vcombine.low %v546_v50, %v550_v51  ;;  %v4500_v63 = vcombine.high %v538_v58, %v542_v59  ;;  %v386_v18 = vld [vmem:[%s5142_s6 + $0x250] sm:$0xff] }
 0x185   : > { %3721 = vmatpush1.bf16.msra.mxu0 %v4299_v4  ;;  %v530_v4 = vld [vmem:[%s5142_s6 + $0x6d0] sm:$0xff] }
 0x186   : > { %3722 = vmatprep.subr.bf16.mxu0 %v4292_v6  ;;  %v4371_v6 = vcombine.low %v410_v56, %v414_v57  ;;  %v390_v19 = vld [vmem:[%s5142_s6 + $0x270] sm:$0xff]  ;;  %v5552_v57 = vld [vmem:[%s5149_s12] sm:$0xff] }
 0x187   : > { %3762 = vmatpush1.bf16.msra.mxu1 %v4427_v5  ;;  %v534_v5 = vld [vmem:[%s5142_s6 + $0x6f0] sm:$0xff]  ;;  %v4348_v25 = vcombine.high %v386_v18, %v390_v19 }
 0x188   : > { %3763 = vmatprep.subr.bf16.mxu1 %v4420_v7  ;;  %v4499_v7 = vcombine.low %v538_v58, %v542_v59  ;;  %v4492_v9 = vcombine.high %v530_v4, %v534_v5  ;;  %v378_v27 = vld [vmem:[%s5142_s6 + $0x210] sm:$0xff] }
 0x189   : > { %3723 = vmatpush1.bf16.msra.mxu0 %v4291_v12  ;;  %v522_v12 = vld [vmem:[%s5142_s6 + $0x690] sm:$0xff] }
 0x18a   : > { %3724 = vmatprep.subr.bf16.mxu0 %v4284_v14  ;;  %v4363_v14 = vcombine.low %v402_v0, %v406_v1  ;;  %v382_v29 = vld [vmem:[%s5142_s6 + $0x230] sm:$0xff] }
 0x18b   : > { %3764 = vmatpush1.bf16.msra.mxu1 %v4419_v13  ;;  %v526_v13 = vld [vmem:[%s5142_s6 + $0x6b0] sm:$0xff]  ;;  %v4340_v37 = vcombine.high %v378_v27, %v382_v29  ;;  %v4339_v48 = vcombine.low %v378_v27, %v382_v29 }
 0x18c   : > { %3765 = vmatprep.subr.bf16.mxu1 %v4412_v15  ;;  %v4491_v15 = vcombine.low %v530_v4, %v534_v5  ;;  %v4484_v17 = vcombine.high %v522_v12, %v526_v13  ;;  %v626_v40 = vld [vmem:[%s5142_s6 + $0x9d0] sm:$0xff] }
 0x18d   : > { %3725 = vmatpush1.bf16.msra.mxu0 %v4283_v20  ;;  %v514_v20 = vld [vmem:[%s5142_s6 + $0x650] sm:$0xff] }
 0x18e   : > { %3726 = vmatprep.subr.bf16.mxu0 %v4276_v22  ;;  %v4355_v22 = vcombine.low %v394_v10, %v398_v11  ;;  %v750_v56 = vld [vmem:[%s5142_s6 + $0xdb0] sm:$0xff] }
 0x18f   : > { %3766 = vmatpush1.bf16.msra.mxu1 %v4411_v21  ;;  %v518_v21 = vld [vmem:[%s5142_s6 + $0x670] sm:$0xff] }
 0x190   : > { %3767 = vmatprep.subr.bf16.mxu1 %v4404_v23  ;;  %v4483_v23 = vcombine.low %v522_v12, %v526_v13  ;;  %v4476_v26 = vcombine.high %v514_v20, %v518_v21  ;;  %v4475_v35 = vcombine.low %v514_v20, %v518_v21  ;;  %v610_v0 = vld [vmem:[%s5142_s6 + $0x950] sm:$0xff] }
 0x191   : > { %3727 = vmatpush1.bf16.msra.mxu0 %v4275_v30  ;;  %v506_v30 = vld [vmem:[%s5142_s6 + $0x610] sm:$0xff] }
 0x192   : > { %3728 = vmatprep.subr.bf16.mxu0 %v4396_v33  ;;  %v4042_v33 = vlaneseq  ;;  %v614_v1 = vld [vmem:[%s5142_s6 + $0x970] sm:$0xff] }
 0x193   : > { %3768 = vmatpush1.bf16.msra.mxu1 %v4403_v32  ;;  %v510_v32 = vld [vmem:[%s5142_s6 + $0x630] sm:$0xff]  ;;  %v4571_v29 = vcombine.low %v610_v0, %v614_v1 }
 0x194   : > { %3769 = vmatprep.subr.bf16.mxu1 %v4524_v34  ;;  %v4347_v34 = vcombine.low %v386_v18, %v390_v19  ;;  %v4468_v38 = vcombine.high %v506_v30, %v510_v32  ;;  %v4467_v49 = vcombine.low %v506_v30, %v510_v32  ;;  %v602_v19 = vld [vmem:[%s5142_s6 + $0x910] sm:$0xff] }
 0x195   : > { %3729 = vmatpush2.bf16.msra.mxu0 %v4395_v42  ;;  %v630_v42 = vld [vmem:[%s5142_s6 + $0x9f0] sm:$0xff] }
 0x196   : > { %3730 = vmatprep.subr.bf16.mxu0 %v4388_v45  ;;  %v754_v45 = vld [vmem:[%s5142_s6 + $0xdd0] sm:$0xff]  ;;  %v4588_v50 = vcombine.high %v626_v40, %v630_v42  ;;  %v4587_v58 = vcombine.low %v626_v40, %v630_v42 }
 0x197   : > { %3770 = vmatpush2.bf16.msra.mxu1 %v4523_v43  ;;  %v5542_v43 = vshrl.u32 %v4042_v33, 7  ;;  %v606_v20 = vld [vmem:[%s5142_s6 + $0x930] sm:$0xff] }
 0x198   : > { %3771 = vmatprep.subr.bf16.mxu1 %v4516_v46  ;;  %v758_v46 = vld [vmem:[%s5142_s6 + $0xdf0] sm:$0xff]  ;;  %v4564_v33 = vcombine.high %v602_v19, %v606_v20 }
 0x199   : > { %3731 = vmatpush2.bf16.msra.mxu0 %v4387_v52  ;;  %v4716_v51 = vcombine.high %v754_v45, %v758_v46  ;;  %v618_v52 = vld [vmem:[%s5142_s6 + $0x990] sm:$0xff]  ;;  %v4715_v59 = vcombine.low %v754_v45, %v758_v46 }
 0x19a   : > { %3732 = vmatprep.subr.bf16.mxu0 %v4380_v54  ;;  %v4044_v54 = vsub.s32 0, %v5542_v43  ;;  %v594_v40 = vld [vmem:[%s5142_s6 + $0x8d0] sm:$0xff] }
 0x19b   : > { %3772 = vmatpush2.bf16.msra.mxu1 %v4515_v53  ;;  %v622_v53 = vld [vmem:[%s5142_s6 + $0x9b0] sm:$0xff] }
 0x19c   : > { %3773 = vmatprep.subr.bf16.mxu1 %v4508_v55  ;;  %v746_v55 = vld [vmem:[%s5142_s6 + $0xd90] sm:$0xff]  ;;  %v4045_v5 = vrot.slane %v5552_v57, %v4044_v54  ;;  %v4579_v10 = vcombine.low %v618_v52, %v622_v53 }
 0x19d   : > { %3733 = vmatpush2.bf16.msra.mxu0 %v4379_v60  ;;  %v4048_v60 = vsub.s32 1, %v5542_v43  ;;  %v4707_v11 = vcombine.low %v746_v55, %v750_v56  ;;  %v598_v42 = vld [vmem:[%s5142_s6 + $0x8f0] sm:$0xff] }
 0x19e   : > { %3734 = vmatprep.subr.bf16.mxu0 %v4372_v62  ;;  %v5556_v62 = vld [vmem:[%s5155_s14] sm:$0xff] }
 0x19f   : > { %3774 = vmatpush2.bf16.msra.mxu1 %v4507_v61  ;;  %v4580_v61 = vcombine.high %v618_v52, %v622_v53  ;;  %v4095_v12 = vrot.slane %v5556_v62, %v4044_v54  ;;  %v4099_v27 = vrot.slane %v5556_v62, %v4048_v60  ;;  %v722_v45 = vld [vmem:[%s5142_s6 + $0xcd0] sm:$0xff] }
 0x1a0   : > { %3775 = vmatprep.subr.bf16.mxu1 %v4500_v63  ;;  %v4708_v63 = vcombine.high %v746_v55, %v750_v56  ;;  %v726_v46 = vld [vmem:[%s5142_s6 + $0xcf0] sm:$0xff] }
 0x1a1   : > { %3735 = vmatpush2.bf16.msra.mxu0 %v4371_v6  ;;  %v738_v6 = vld [vmem:[%s5142_s6 + $0xd50] sm:$0xff]  ;;  %v4684_v52 = vcombine.high %v722_v45, %v726_v46 }
 0x1a2   : > { %3736 = vmatprep.subr.bf16.mxu0 %v4364_v8  ;;  %v586_v53 = vld [vmem:[%s5142_s6 + $0x890] sm:$0xff] }
 0x1a3   : > { %3776 = vmatpush2.bf16.msra.mxu1 %v4499_v7  ;;  %v742_v7 = vld [vmem:[%s5142_s6 + $0xd70] sm:$0xff] }
 0x1a4   : > { %3777 = vmatprep.subr.bf16.mxu1 %v4492_v9  ;;  %v4700_v18 = vcombine.high %v738_v6, %v742_v7  ;;  %v4699_v32 = vcombine.low %v738_v6, %v742_v7  ;;  %v590_v54 = vld [vmem:[%s5142_s6 + $0x8b0] sm:$0xff] }
 0x1a5   : > { %3737 = vmatpush2.bf16.msra.mxu0 %v4363_v14  ;;  %v4049_v14 = vrot.slane %v5552_v57, %v4048_v60  ;;  %v714_v55 = vld [vmem:[%s5142_s6 + $0xc90] sm:$0xff]  ;;  %v4548_v60 = vcombine.high %v586_v53, %v590_v54 }
 0x1a6   : > { %3738 = vmatprep.subr.bf16.mxu0 %v4356_v16  ;;  %v718_v56 = vld [vmem:[%s5142_s6 + $0xcb0] sm:$0xff] }
 0x1a7   : > { %3778 = vmatpush2.bf16.msra.mxu1 %v4491_v15  ;;  %v4572_v15 = vcombine.high %v610_v0, %v614_v1  ;;  %v582_v0 = vld [vmem:[%s5142_s6 + $0x870] sm:$0xff]  ;;  %v4675_v6 = vcombine.low %v714_v55, %v718_v56 }
 0x1a8   : > { %3779 = vmatprep.subr.bf16.mxu1 %v4484_v17  ;;  %v706_v1 = vld [vmem:[%s5142_s6 + $0xc50] sm:$0xff] }
 0x1a9   : > { %3739 = vmatpush2.bf16.msra.mxu0 %v4355_v22  ;;  %v730_v22 = vld [vmem:[%s5142_s6 + $0xd10] sm:$0xff] }
 0x1aa   : > { %3740 = vmatprep.subr.bf16.mxu0 %v4348_v25 }
 0x1ab   : > { %3780 = vmatpush2.bf16.msra.mxu1 %v4483_v23  ;;  %v734_v23 = vld [vmem:[%s5142_s6 + $0xd30] sm:$0xff] }
 0x1ac   : > { %3781 = vmatprep.subr.bf16.mxu1 %v4476_v26 }
 0x1ad   : > { %3741 = vmatpush2.bf16.msra.mxu0 %v4347_v34 }
 0x1ae   : > { %3742 = vmatprep.subr.bf16.mxu0 %v4340_v37 }
 0x1af   : > { %3782 = vmatpush2.bf16.msra.mxu1 %v4475_v35 }
 0x1b0   : > { %3783 = vmatprep.subr.bf16.mxu1 %v4468_v38  ;;  %v4692_v38 = vcombine.high %v730_v22, %v734_v23 }
 0x1b1   : > { %3743 = vmatpush2.bf16.msra.mxu0 %v4339_v48 }
 0x1b2   : > { %3794 = vmatprep.subr.bf16.mxu0 %v4588_v50  ;;  %v4691_v50 = vcombine.low %v730_v22, %v734_v23 }
 0x1b3   : > { %3784 = vmatpush2.bf16.msra.mxu1 %v4467_v49  ;;  %v4563_v49 = vcombine.low %v602_v19, %v606_v20  ;;  %v822_v19 = vld [vmem:[%s5142_s6 + $0xff0] sm:$0xff] }
 0x1b4   : > { %3835 = vmatprep.subr.bf16.mxu1 %v4716_v51  ;;  %v3500_v4 = vpop.f32.mrf.mxu0  ;;  %3745 = vmatmul.mubr.bf16.vlgmr.msra.gmra.mxu0 %v5258_v24  ;;  %v4556_v51 = vcombine.high %v594_v40, %v598_v42 }
 0x1b5   : > { %v3501_v8 = vadd.f32 %v3500_v4, %v5482_v31  ;;  %3795 = vmatpush1.bf16.msra.mxu0 %v4587_v58  ;;  %3826 = vmatprep.mubr.bf16.mxu0 %v5266_v36  ;;  %v4555_v58 = vcombine.low %v594_v40, %v598_v42  ;;  %v710_v4 = vld [vmem:[%s5142_s6 + $0xc70] sm:$0xff] }
 0x1b6   : > { %v3541_v9 = vpop.f32.mrf.mxu1  ;;  %3786 = vmatmul.mubr.bf16.vlgmr.msra.gmra.mxu1 %v5262_v28  ;;  %v3502_v13 = vpop.f32.mrf.mxu0  ;;  %3796 = vmatprep.subr.bf16.mxu0 %v4580_v61  ;;  %v4676_v61 = vcombine.high %v714_v55, %v718_v56  ;;  %v806_v40 = vld [vmem:[%s5142_s6 + $0xf70] sm:$0xff] }
 0x1b7   : > { %3836 = vmatpush1.bf16.msra.mxu1 %v4715_v59  ;;  %v3542_v16 = vadd.f32 %v3541_v9, %v3501_v8  ;;  %v3503_v31 = vadd.f32 %v3502_v13, %v5487_v41  ;;  %3867 = vmatprep.mubr.bf16.mxu1 %v5271_v39  ;;  %v4683_v59 = vcombine.low %v722_v45, %v726_v46  ;;  %v570_v9 = vld [vmem:[%s5142_s6 + $0x810] sm:$0xff] }
 0x1b8   : > { %v3543_v17 = vpop.f32.mrf.mxu1  ;;  %3837 = vmatprep.subr.bf16.mxu1 %v4708_v63  ;;  %v3504_v21 = vpop.f32.mrf.mxu0  ;;  %v578_v63 = vld [vmem:[%s5142_s6 + $0x850] sm:$0xff]  ;;  %v4668_v8 = vcombine.high %v706_v1, %v710_v4 }
 0x1b9   : > { %v4082_v25 = vmul.f32 %v4045_v5, %v3542_v16  ;;  %v3544_v26 = vadd.f32 %v3543_v17, %v3503_v31  ;;  %3797 = vmatpush1.bf16.msra.mxu0 %v4579_v10  ;;  %v4547_v5 = vcombine.low %v586_v53, %v590_v54  ;;  %v4540_v7 = vcombine.high %v578_v63, %v582_v0  ;;  %v574_v10 = vld [vmem:[%s5142_s6 + $0x830] sm:$0xff] }
 0x1ba   : > { %v3545_v41 = vpop.f32.mrf.mxu1  ;;  %v3505_v30 = vpop.f32.mrf.mxu0  ;;  %3798 = vmatprep.subr.bf16.mxu0 %v4572_v15  ;;  %v4539_v13 = vcombine.low %v578_v63, %v582_v0  ;;  %v4532_v15 = vcombine.high %v570_v9, %v574_v10  ;;  %v690_v31 = vld [vmem:[%s5142_s6 + $0xbd0] sm:$0xff]  ;;  %v4531_v20 = vcombine.low %v570_v9, %v574_v10 }
 0x1bb   : > { %3838 = vmatpush1.bf16.msra.mxu1 %v4707_v11  ;;  %v5576_v34 = vadd.f32 %v4095_v12, %v4082_v25  ;;  %v4083_v35 = vmul.f32 %v4049_v14, %v3544_v26  ;;  %v698_v11 = vld [vmem:[%s5142_s6 + $0xc10] sm:$0xff]  ;;  %v4667_v14 = vcombine.low %v706_v1, %v710_v4 }
 0x1bc   : > { %v3546_v37 = vpop.f32.mrf.mxu1  ;;  %3839 = vmatprep.subr.bf16.mxu1 %v4700_v18  ;;  %v702_v12 = vld [vmem:[%s5142_s6 + $0xc30] sm:$0xff] }
 0x1bd   : > { %v5582_v48 = vadd.f32 %v4099_v27, %v4083_v35  ;;  %3799 = vmatpush1.bf16.msra.mxu0 %v4571_v29  ;;  %v4660_v16 = vcombine.high %v698_v11, %v702_v12  ;;  %v694_v17 = vld [vmem:[%s5142_s6 + $0xbf0] sm:$0xff]  ;;  %v4659_v21 = vcombine.low %v698_v11, %v702_v12 }
 0x1be   : > { %3800 = vmatprep.subr.bf16.mxu0 %v4564_v33  ;;  %v818_v18 = vld [vmem:[%s5142_s6 + $0xfd0] sm:$0xff]  ;;  %v4652_v22 = vcombine.high %v690_v31, %v694_v17  ;;  %v4651_v29 = vcombine.low %v690_v31, %v694_v17 }
 0x1bf   : > { %3840 = vmatpush1.bf16.msra.mxu1 %v4699_v32  ;;  %v4780_v23 = vcombine.high %v818_v18, %v822_v19  ;;  %v682_v25 = vld [vmem:[%s5142_s6 + $0xb90] sm:$0xff]  ;;  %v4779_v30 = vcombine.low %v818_v18, %v822_v19 }
 0x1c0   : > { %3841 = vmatprep.subr.bf16.mxu1 %v4692_v38  ;;  %v686_v26 = vld [vmem:[%s5142_s6 + $0xbb0] sm:$0xff] }
 0x1c1   : > { %3801 = vmatpush1.bf16.msra.mxu0 %v4563_v49  ;;  %v810_v27 = vld [vmem:[%s5142_s6 + $0xf90] sm:$0xff]  ;;  %v4644_v32 = vcombine.high %v682_v25, %v686_v26  ;;  %v4643_v42 = vcombine.low %v682_v25, %v686_v26 }
 0x1c2   : > { %3802 = vmatprep.subr.bf16.mxu0 %v4556_v51  ;;  %v814_v41 = vld [vmem:[%s5142_s6 + $0xfb0] sm:$0xff] }
 0x1c3   : > { %3842 = vmatpush1.bf16.msra.mxu1 %v4691_v50  ;;  %v4772_v33 = vcombine.high %v810_v27, %v814_v41  ;;  %v674_v35 = vld [vmem:[%s5142_s6 + $0xb50] sm:$0xff]  ;;  %v4771_v45 = vcombine.low %v810_v27, %v814_v41 }
 0x1c4   : > { %3843 = vmatprep.subr.bf16.mxu1 %v4684_v52  ;;  %v678_v37 = vld [vmem:[%s5142_s6 + $0xb70] sm:$0xff] }
 0x1c5   : > { %3803 = vmatpush1.bf16.msra.mxu0 %v4555_v58  ;;  %v802_v38 = vld [vmem:[%s5142_s6 + $0xf50] sm:$0xff]  ;;  %v4636_v46 = vcombine.high %v674_v35, %v678_v37  ;;  %v4635_v54 = vcombine.low %v674_v35, %v678_v37  ;;  %v503_v35 = vld [vmem:[%s5142_s6 + $0x5f8] sm:$0xff] }
 0x1c6   : > { %3804 = vmatprep.subr.bf16.mxu0 %v4548_v60  ;;  %v4764_v49 = vcombine.high %v802_v38, %v806_v40  ;;  %v666_v50 = vld [vmem:[%s5142_s6 + $0xb10] sm:$0xff]  ;;  %v4763_v55 = vcombine.low %v802_v38, %v806_v40 }
 0x1c7   : > { %3844 = vmatpush1.bf16.msra.mxu1 %v4683_v59  ;;  %v670_v51 = vld [vmem:[%s5142_s6 + $0xb30] sm:$0xff] }
 0x1c8   : > { %3845 = vmatprep.subr.bf16.mxu1 %v4676_v61  ;;  %v794_v52 = vld [vmem:[%s5142_s6 + $0xf10] sm:$0xff]  ;;  %v4628_v56 = vcombine.high %v666_v50, %v670_v51  ;;  %v4627_v0 = vcombine.low %v666_v50, %v670_v51  ;;  %v495_v50 = vld [vmem:[%s5142_s6 + $0x5b8] sm:$0xff] }
 0x1c9   : > { %3805 = vmatpush1.bf16.msra.mxu0 %v4547_v5  ;;  %v798_v53 = vld [vmem:[%s5142_s6 + $0xf30] sm:$0xff] }
 0x1ca   : > { %3806 = vmatprep.subr.bf16.mxu0 %v4540_v7  ;;  %v4756_v58 = vcombine.high %v794_v52, %v798_v53  ;;  %v658_v59 = vld [vmem:[%s5142_s6 + $0xad0] sm:$0xff]  ;;  %v4755_v1 = vcombine.low %v794_v52, %v798_v53 }
 0x1cb   : > { %3846 = vmatpush1.bf16.msra.mxu1 %v4675_v6  ;;  %v662_v60 = vld [vmem:[%s5142_s6 + $0xaf0] sm:$0xff] }
 0x1cc   : > { %3847 = vmatprep.subr.bf16.mxu1 %v4668_v8  ;;  %v786_v61 = vld [vmem:[%s5142_s6 + $0xed0] sm:$0xff]  ;;  %v4620_v4 = vcombine.high %v658_v59, %v662_v60  ;;  %v4619_v10 = vcombine.low %v658_v59, %v662_v60  ;;  %v483_v59 = vld [vmem:[%s5142_s6 + $0x558] sm:$0xff] }
 0x1cd   : > { %3807 = vmatpush1.bf16.msra.mxu0 %v4539_v13  ;;  %v790_v63 = vld [vmem:[%s5142_s6 + $0xef0] sm:$0xff]  ;;  %v487_v60 = vld [vmem:[%s5142_s6 + $0x578] sm:$0xff] }
 0x1ce   : > { %3808 = vmatprep.subr.bf16.mxu0 %v4532_v15  ;;  %v4748_v5 = vcombine.high %v786_v61, %v790_v63  ;;  %v650_v6 = vld [vmem:[%s5142_s6 + $0xa90] sm:$0xff]  ;;  %v4747_v11 = vcombine.low %v786_v61, %v790_v63 }
 0x1cf   : > { %3848 = vmatpush1.bf16.msra.mxu1 %v4667_v14  ;;  %v654_v7 = vld [vmem:[%s5142_s6 + $0xab0] sm:$0xff] }
 0x1d0   : > { %3849 = vmatprep.subr.bf16.mxu1 %v4660_v16  ;;  %v778_v8 = vld [vmem:[%s5142_s6 + $0xe90] sm:$0xff]  ;;  %v4612_v12 = vcombine.high %v650_v6, %v654_v7  ;;  %v4611_v17 = vcombine.low %v650_v6, %v654_v7  ;;  %v4446_v7 = vcombine.high %v483_v59, %v487_v60 }
 0x1d1   : > { %3809 = vmatpush1.bf16.msra.mxu0 %v4531_v20  ;;  %v782_v9 = vld [vmem:[%s5142_s6 + $0xeb0] sm:$0xff] }
 0x1d2   : > { %3810 = vmatprep.subr.bf16.mxu0 %v4652_v22  ;;  %v4740_v13 = vcombine.high %v778_v8, %v782_v9  ;;  %v642_v14 = vld [vmem:[%s5142_s6 + $0xa50] sm:$0xff]  ;;  %v4739_v18 = vcombine.low %v778_v8, %v782_v9  ;;  %v347_v8 = vld [vmem:[%s5142_s6 + $0x118] sm:$0xff] }
 0x1d3   : > { %3850 = vmatpush1.bf16.msra.mxu1 %v4659_v21  ;;  %v646_v15 = vld [vmem:[%s5142_s6 + $0xa70] sm:$0xff]  ;;  %v351_v9 = vld [vmem:[%s5142_s6 + $0x138] sm:$0xff] }
 0x1d4   : > { %3851 = vmatprep.subr.bf16.mxu1 %v4780_v23  ;;  %v770_v16 = vld [vmem:[%s5142_s6 + $0xe50] sm:$0xff]  ;;  %v4604_v19 = vcombine.high %v642_v14, %v646_v15  ;;  %v4603_v26 = vcombine.low %v642_v14, %v646_v15 }
 0x1d5   : > { %3811 = vmatpush2.bf16.msra.mxu0 %v4651_v29  ;;  %v774_v31 = vld [vmem:[%s5142_s6 + $0xe70] sm:$0xff] }
 0x1d6   : > { %3812 = vmatprep.subr.bf16.mxu0 %v4644_v32  ;;  %v4732_v20 = vcombine.high %v770_v16, %v774_v31  ;;  %v634_v21 = vld [vmem:[%s5142_s6 + $0xa10] sm:$0xff]  ;;  %v4731_v27 = vcombine.low %v770_v16, %v774_v31  ;;  %v375_v32 = vld [vmem:[%s5142_s6 + $0x1f8] sm:$0xff]  ;;  %v4445_v31 = vcombine.low %v483_v59, %v487_v60 }
 0x1d7   : > { %3852 = vmatpush2.bf16.msra.mxu1 %v4779_v30  ;;  %v638_v22 = vld [vmem:[%s5142_s6 + $0xa30] sm:$0xff]  ;;  %v371_v30 = vld [vmem:[%s5142_s6 + $0x1d8] sm:$0xff] }
 0x1d8   : > { %3853 = vmatprep.subr.bf16.mxu1 %v4772_v33  ;;  %v762_v23 = vld [vmem:[%s5142_s6 + $0xe10] sm:$0xff]  ;;  %v4596_v41 = vcombine.high %v634_v21, %v638_v22  ;;  %v499_v33 = vld [vmem:[%s5142_s6 + $0x5d8] sm:$0xff]  ;;  %v4595_v37 = vcombine.low %v634_v21, %v638_v22  ;;  %v4334_v40 = vcombine.high %v371_v30, %v375_v32  ;;  %v4333_v51 = vcombine.low %v371_v30, %v375_v32 }
 0x1d9   : > { %3813 = vmatpush2.bf16.msra.mxu0 %v4643_v42  ;;  %v766_v25 = vld [vmem:[%s5142_s6 + $0xe30] sm:$0xff]  ;;  %v4462_v42 = vcombine.high %v499_v33, %v503_v35  ;;  %v4461_v52 = vcombine.low %v499_v33, %v503_v35  ;;  %v467_v21 = vld [vmem:[%s5142_s6 + $0x4d8] sm:$0xff] }
 0x1da   : > { %3814 = vmatprep.subr.bf16.mxu0 %v4636_v46  ;;  %v4724_v29 = vcombine.high %v762_v23, %v766_v25  ;;  %v4723_v38 = vcombine.low %v762_v23, %v766_v25  ;;  %v367_v46 = vld [vmem:[%s5142_s6 + $0x1b8] sm:$0xff] }
 0x1db   : > { %3854 = vmatpush2.bf16.msra.mxu1 %v4771_v45  ;;  %v363_v45 = vld [vmem:[%s5142_s6 + $0x198] sm:$0xff] }
 0x1dc   : > { %3855 = vmatprep.subr.bf16.mxu1 %v4764_v49  ;;  %v491_v49 = vld [vmem:[%s5142_s6 + $0x598] sm:$0xff]  ;;  %v4326_v53 = vcombine.high %v363_v45, %v367_v46  ;;  %v4325_v63 = vcombine.low %v363_v45, %v367_v46 }
 0x1dd   : > { %3815 = vmatpush2.bf16.msra.mxu0 %v4635_v54  ;;  %v4454_v54 = vcombine.high %v491_v49, %v495_v50  ;;  %v471_v22 = vld [vmem:[%s5142_s6 + $0x4f8] sm:$0xff] }
 0x1de   : > { %3816 = vmatprep.subr.bf16.mxu0 %v4628_v56  ;;  %v359_v56 = vld [vmem:[%s5142_s6 + $0x178] sm:$0xff]  ;;  %v4429_v33 = vcombine.low %v467_v21, %v471_v22 }
 0x1df   : > { %3856 = vmatpush2.bf16.msra.mxu1 %v4763_v55  ;;  %v355_v55 = vld [vmem:[%s5142_s6 + $0x158] sm:$0xff] }
 0x1e0   : > { %3857 = vmatprep.subr.bf16.mxu1 %v4756_v58  ;;  %v4317_v15 = vcombine.low %v355_v55, %v359_v56  ;;  %v463_v30 = vld [vmem:[%s5142_s6 + $0x4b8] sm:$0xff] }
 0x1e1   : > { %3817 = vmatpush2.bf16.msra.mxu0 %v4627_v0  ;;  %v455_v45 = vld [vmem:[%s5142_s6 + $0x478] sm:$0xff] }
 0x1e2   : > { %3818 = vmatprep.subr.bf16.mxu0 %v4620_v4  ;;  %v4453_v4 = vcombine.low %v491_v49, %v495_v50 }
 0x1e3   : > { %3858 = vmatpush2.bf16.msra.mxu1 %v4755_v1 }
 0x1e4   : > { %3859 = vmatprep.subr.bf16.mxu1 %v4748_v5  ;;  %v4318_v5 = vcombine.high %v355_v55, %v359_v56  ;;  %v447_v55 = vld [vmem:[%s5142_s6 + $0x438] sm:$0xff] }
 0x1e5   : > { %3819 = vmatpush2.bf16.msra.mxu0 %v4619_v10 }
 0x1e6   : > { %3820 = vmatprep.subr.bf16.mxu0 %v4612_v12  ;;  %v475_v12 = vld [vmem:[%s5142_s6 + $0x518] sm:$0xff] }
 0x1e7   : > { %3860 = vmatpush2.bf16.msra.mxu1 %v4747_v11 }
 0x1e8   : > { %3861 = vmatprep.subr.bf16.mxu1 %v4740_v13  ;;  %v479_v13 = vld [vmem:[%s5142_s6 + $0x538] sm:$0xff] }
 0x1e9   : > { %3821 = vmatpush2.bf16.msra.mxu0 %v4611_v17  ;;  %v4310_v17 = vcombine.high %v347_v8, %v351_v9  ;;  %v4437_v23 = vcombine.low %v475_v12, %v479_v13 }
 0x1ea   : > { %3822 = vmatprep.subr.bf16.mxu0 %v4604_v19  ;;  %v339_v19 = vld [vmem:[%s5142_s6 + $0xd8] sm:$0xff] }
 0x1eb   : > { %3862 = vmatpush2.bf16.msra.mxu1 %v4739_v18  ;;  %v4438_v18 = vcombine.high %v475_v12, %v479_v13  ;;  %v555_v12 = vld [vmem:[%s5142_s6 + $0x798] sm:$0xff] }
 0x1ec   : > { %3863 = vmatprep.subr.bf16.mxu1 %v4732_v20  ;;  %v343_v20 = vld [vmem:[%s5142_s6 + $0xf8] sm:$0xff] }
 0x1ed   : > { %3823 = vmatpush2.bf16.msra.mxu0 %v4603_v26  ;;  %v4302_v25 = vcombine.high %v339_v19, %v343_v20  ;;  %v4430_v26 = vcombine.high %v467_v21, %v471_v22  ;;  %v4301_v32 = vcombine.low %v339_v19, %v343_v20  ;;  %v559_v13 = vld [vmem:[%s5142_s6 + $0x7b8] sm:$0xff] }
 0x1ee   : > { %3824 = vmatprep.subr.bf16.mxu0 %v4596_v41  ;;  %v335_v41 = vld [vmem:[%s5142_s6 + $0xb8] sm:$0xff]  ;;  %v4517_v21 = vcombine.low %v555_v12, %v559_v13 }
 0x1ef   : > { %3864 = vmatpush2.bf16.msra.mxu1 %v4731_v27  ;;  %v331_v27 = vld [vmem:[%s5142_s6 + $0x98] sm:$0xff] }
 0x1f0   : > { %3865 = vmatprep.subr.bf16.mxu1 %v4724_v29  ;;  %v459_v29 = vld [vmem:[%s5142_s6 + $0x498] sm:$0xff]  ;;  %v4294_v35 = vcombine.high %v331_v27, %v335_v41  ;;  %v4293_v46 = vcombine.low %v331_v27, %v335_v41 }
 0x1f1   : > { %3825 = vmatpush2.bf16.msra.mxu0 %v4595_v37  ;;  %v4422_v37 = vcombine.high %v459_v29, %v463_v30  ;;  %v4421_v49 = vcombine.low %v459_v29, %v463_v30  ;;  %v551_v19 = vld [vmem:[%s5142_s6 + $0x778] sm:$0xff] }
 0x1f2   : > { %3876 = vmatprep.subr.bf16.mxu0 %v4334_v40  ;;  %v327_v40 = vld [vmem:[%s5142_s6 + $0x78] sm:$0xff] }
 0x1f3   : > { %3866 = vmatpush2.bf16.msra.mxu1 %v4723_v38  ;;  %v323_v38 = vld [vmem:[%s5142_s6 + $0x58] sm:$0xff] }
 0x1f4   : > { %3917 = vmatprep.subr.bf16.mxu1 %v4462_v42  ;;  %v3582_v58 = vpop.f32.mrf.mxu0  ;;  %3827 = vmatmul.mubr.bf16.vlgmr.msra.gmra.mxu0 %v5334_v44  ;;  %v451_v42 = vld [vmem:[%s5142_s6 + $0x458] sm:$0xff]  ;;  %v4286_v50 = vcombine.high %v323_v38, %v327_v40  ;;  %v4285_v56 = vcombine.low %v323_v38, %v327_v40 }
 0x1f5   : > { %3877 = vmatpush1.bf16.msra.mxu0 %v4333_v51  ;;  %3908 = vmatprep.mubr.bf16.mxu0 %v5212_v2  ;;  %v4414_v51 = vcombine.high %v451_v42, %v455_v45  ;;  %v543_v27 = vld [vmem:[%s5142_s6 + $0x738] sm:$0xff] }
 0x1f6   : > { %v3623_v61 = vpop.f32.mrf.mxu1  ;;  %3868 = vmatmul.mubr.bf16.vlgmr.msra.gmra.mxu1 %v5338_v47  ;;  %v3584_v1 = vpop.f32.mrf.mxu0  ;;  %3878 = vmatprep.subr.bf16.mxu0 %v4326_v53  ;;  %v319_v53 = vld [vmem:[%s5142_s6 + $0x38] sm:$0xff] }
 0x1f7   : > { %v5642_v0 = vadd.f32 %v3623_v61, %v3582_v58  ;;  %3918 = vmatpush1.bf16.msra.mxu1 %v4461_v52  ;;  %3949 = vmatprep.mubr.bf16.mxu1 %v5214_v3  ;;  %v4309_v3 = vcombine.low %v347_v8, %v351_v9  ;;  %v315_v52 = vld [vmem:[%s5142_s6 + $0x18] sm:$0xff]  ;;  %v4413_v58 = vcombine.low %v451_v42, %v455_v45 }
 0x1f8   : > { %v3625_v6 = vpop.f32.mrf.mxu1  ;;  %3919 = vmatprep.subr.bf16.mxu1 %v4454_v54  ;;  %v3586_v11 = vpop.f32.mrf.mxu0  ;;  %v443_v54 = vld [vmem:[%s5142_s6 + $0x418] sm:$0xff]  ;;  %v4278_v59 = vcombine.high %v315_v52, %v319_v53 }
 0x1f9   : > { %v5647_v10 = vadd.f32 %v3625_v6, %v3584_v1  ;;  %3879 = vmatpush1.bf16.msra.mxu0 %v4325_v63  ;;  %v4406_v60 = vcombine.high %v443_v54, %v447_v55  ;;  %v435_v61 = vld [vmem:[%s5142_s6 + $0x3d8] sm:$0xff]  ;;  %v4405_v6 = vcombine.low %v443_v54, %v447_v55 }
 0x1fa   : > { %v3627_v14 = vpop.f32.mrf.mxu1  ;;  %v3587_v16 = vpop.f32.mrf.mxu0  ;;  %3880 = vmatprep.subr.bf16.mxu0 %v4318_v5  ;;  %v439_v63 = vld [vmem:[%s5142_s6 + $0x3f8] sm:$0xff]  ;;  %v4277_v5 = vcombine.low %v315_v52, %v319_v53 }
 0x1fb   : > { %3920 = vmatpush1.bf16.msra.mxu1 %v4453_v4  ;;  %v563_v1 = vld [vmem:[%s5142_s6 + $0x7d8] sm:$0xff]  ;;  %v4397_v14 = vcombine.low %v435_v61, %v439_v63 }
 0x1fc   : > { %v3628_v2 = vpop.f32.mrf.mxu1  ;;  %3921 = vmatprep.subr.bf16.mxu1 %v4446_v7  ;;  %v567_v4 = vld [vmem:[%s5142_s6 + $0x7f8] sm:$0xff]  ;;  %v4398_v7 = vcombine.high %v435_v61, %v439_v63 }
 0x1fd   : > { %3881 = vmatpush1.bf16.msra.mxu0 %v4317_v15  ;;  %v4526_v8 = vcombine.high %v563_v1, %v567_v4  ;;  %v427_v9 = vld [vmem:[%s5142_s6 + $0x398] sm:$0xff]  ;;  %v4525_v15 = vcombine.low %v563_v1, %v567_v4 }
 0x1fe   : > { %3882 = vmatprep.subr.bf16.mxu0 %v4310_v17  ;;  %v431_v11 = vld [vmem:[%s5142_s6 + $0x3b8] sm:$0xff] }
 0x1ff   : > { %3922 = vmatpush1.bf16.msra.mxu1 %v4445_v31  ;;  %v4390_v16 = vcombine.high %v427_v9, %v431_v11  ;;  %v4518_v31 = vcombine.high %v555_v12, %v559_v13  ;;  %v419_v17 = vld [vmem:[%s5142_s6 + $0x358] sm:$0xff]  ;;  %v4389_v20 = vcombine.low %v427_v9, %v431_v11 }
 0x200   : > { %3923 = vmatprep.subr.bf16.mxu1 %v4438_v18  ;;  %v423_v2 = vld [vmem:[%s5142_s6 + $0x378] sm:$0xff] }
 0x201   : > { %3883 = vmatpush1.bf16.msra.mxu0 %v4309_v3  ;;  %v547_v18 = vld [vmem:[%s5142_s6 + $0x758] sm:$0xff]  ;;  %v4382_v22 = vcombine.high %v419_v17, %v423_v2  ;;  %v4381_v41 = vcombine.low %v419_v17, %v423_v2 }
 0x202   : > { %3884 = vmatprep.subr.bf16.mxu0 %v4302_v25  ;;  %v4510_v3 = vcombine.high %v547_v18, %v551_v19  ;;  %v415_v25 = vld [vmem:[%s5142_s6 + $0x338] sm:$0xff]  ;;  %v4509_v29 = vcombine.low %v547_v18, %v551_v19 }
 0x203   : > { %3924 = vmatpush1.bf16.msra.mxu1 %v4437_v23  ;;  %v411_v23 = vld [vmem:[%s5142_s6 + $0x318] sm:$0xff] }
 0x204   : > { %3925 = vmatprep.subr.bf16.mxu1 %v4430_v26  ;;  %v539_v26 = vld [vmem:[%s5142_s6 + $0x718] sm:$0xff]  ;;  %v4374_v30 = vcombine.high %v411_v23, %v415_v25  ;;  %v4373_v40 = vcombine.low %v411_v23, %v415_v25 }
 0x205   : > { %3885 = vmatpush1.bf16.msra.mxu0 %v4301_v32  ;;  %v4502_v32 = vcombine.high %v539_v26, %v543_v27  ;;  %v535_v38 = vld [vmem:[%s5142_s6 + $0x6f8] sm:$0xff]  ;;  %v4501_v42 = vcombine.low %v539_v26, %v543_v27 }
 0x206   : > { %3886 = vmatprep.subr.bf16.mxu0 %v4294_v35  ;;  %v407_v35 = vld [vmem:[%s5142_s6 + $0x2f8] sm:$0xff] }
 0x207   : > { %3926 = vmatpush1.bf16.msra.mxu1 %v4429_v33  ;;  %v403_v33 = vld [vmem:[%s5142_s6 + $0x2d8] sm:$0xff] }
 0x208   : > { %3927 = vmatprep.subr.bf16.mxu1 %v4422_v37  ;;  %v531_v37 = vld [vmem:[%s5142_s6 + $0x6d8] sm:$0xff]  ;;  %v4366_v45 = vcombine.high %v403_v33, %v407_v35  ;;  %v4365_v53 = vcombine.low %v403_v33, %v407_v35 }
 0x209   : > { %3887 = vmatpush1.bf16.msra.mxu0 %v4293_v46  ;;  %v4494_v46 = vcombine.high %v531_v37, %v535_v38  ;;  %v527_v52 = vld [vmem:[%s5142_s6 + $0x6b8] sm:$0xff]  ;;  %v4493_v54 = vcombine.low %v531_v37, %v535_v38 }
 0x20a   : > { %3888 = vmatprep.subr.bf16.mxu0 %v4286_v50  ;;  %v399_v50 = vld [vmem:[%s5142_s6 + $0x2b8] sm:$0xff] }
 0x20b   : > { %3928 = vmatpush1.bf16.msra.mxu1 %v4421_v49  ;;  %v395_v49 = vld [vmem:[%s5142_s6 + $0x298] sm:$0xff] }
 0x20c   : > { %3929 = vmatprep.subr.bf16.mxu1 %v4414_v51  ;;  %v523_v51 = vld [vmem:[%s5142_s6 + $0x698] sm:$0xff]  ;;  %v4358_v55 = vcombine.high %v395_v49, %v399_v50  ;;  %v4357_v63 = vcombine.low %v395_v49, %v399_v50 }
 0x20d   : > { %3889 = vmatpush1.bf16.msra.mxu0 %v4285_v56  ;;  %v4486_v56 = vcombine.high %v523_v51, %v527_v52  ;;  %v519_v61 = vld [vmem:[%s5142_s6 + $0x678] sm:$0xff]  ;;  %v4485_v1 = vcombine.low %v523_v51, %v527_v52 }
 0x20e   : > { %3890 = vmatprep.subr.bf16.mxu0 %v4278_v59  ;;  %v391_v59 = vld [vmem:[%s5142_s6 + $0x278] sm:$0xff] }
 0x20f   : > { %3930 = vmatpush1.bf16.msra.mxu1 %v4413_v58  ;;  %v387_v58 = vld [vmem:[%s5142_s6 + $0x258] sm:$0xff] }
 0x210   : > { %3931 = vmatprep.subr.bf16.mxu1 %v4406_v60  ;;  %v515_v60 = vld [vmem:[%s5142_s6 + $0x658] sm:$0xff]  ;;  %v4350_v4 = vcombine.high %v387_v58, %v391_v59  ;;  %v4349_v11 = vcombine.low %v387_v58, %v391_v59 }
 0x211   : > { %3891 = vmatpush1.bf16.msra.mxu0 %v4277_v5  ;;  %v4478_v5 = vcombine.high %v515_v60, %v519_v61  ;;  %v511_v9 = vld [vmem:[%s5142_s6 + $0x638] sm:$0xff]  ;;  %v4477_v12 = vcombine.low %v515_v60, %v519_v61 }
 0x212   : > { %3892 = vmatprep.subr.bf16.mxu0 %v4398_v7  ;;  %v383_v7 = vld [vmem:[%s5142_s6 + $0x238] sm:$0xff] }
 0x213   : > { %3932 = vmatpush1.bf16.msra.mxu1 %v4405_v6  ;;  %v379_v6 = vld [vmem:[%s5142_s6 + $0x218] sm:$0xff] }
 0x214   : > { %3933 = vmatprep.subr.bf16.mxu1 %v4526_v8  ;;  %v507_v8 = vld [vmem:[%s5142_s6 + $0x618] sm:$0xff]  ;;  %v4342_v13 = vcombine.high %v379_v6, %v383_v7  ;;  %v4341_v2 = vcombine.low %v379_v6, %v383_v7 }
 0x215   : > { %3893 = vmatpush2.bf16.msra.mxu0 %v4397_v14  ;;  %v4470_v14 = vcombine.high %v507_v8, %v511_v9  ;;  %v759_v17 = vld [vmem:[%s5142_s6 + $0xdf8] sm:$0xff]  ;;  %v4469_v18 = vcombine.low %v507_v8, %v511_v9 }
 0x216   : > { %3894 = vmatprep.subr.bf16.mxu0 %v4390_v16  ;;  %v631_v16 = vld [vmem:[%s5142_s6 + $0x9f8] sm:$0xff] }
 0x217   : > { %3934 = vmatpush2.bf16.msra.mxu1 %v4525_v15  ;;  %v627_v15 = vld [vmem:[%s5142_s6 + $0x9d8] sm:$0xff] }
 0x218   : > { %3935 = vmatprep.subr.bf16.mxu1 %v4518_v31  ;;  %v755_v31 = vld [vmem:[%s5142_s6 + $0xdd8] sm:$0xff]  ;;  %v4590_v19 = vcombine.high %v627_v15, %v631_v16  ;;  %v4589_v26 = vcombine.low %v627_v15, %v631_v16 }
 0x219   : > { %3895 = vmatpush2.bf16.msra.mxu0 %v4389_v20  ;;  %v4718_v20 = vcombine.high %v755_v31, %v759_v17  ;;  %v747_v23 = vld [vmem:[%s5142_s6 + $0xd98] sm:$0xff]  ;;  %v4717_v27 = vcombine.low %v755_v31, %v759_v17 }
 0x21a   : > { %3896 = vmatprep.subr.bf16.mxu0 %v4382_v22  ;;  %v623_v22 = vld [vmem:[%s5142_s6 + $0x9b8] sm:$0xff] }
 0x21b   : > { %3936 = vmatpush2.bf16.msra.mxu1 %v4517_v21  ;;  %v619_v21 = vld [vmem:[%s5142_s6 + $0x998] sm:$0xff] }
 0x21c   : > { %3937 = vmatprep.subr.bf16.mxu1 %v4510_v3  ;;  %v4052_v3 = vsub.s32 2, %v5542_v43  ;;  %v751_v25 = vld [vmem:[%s5142_s6 + $0xdb8] sm:$0xff] }
 0x21d   : > { %3897 = vmatpush2.bf16.msra.mxu0 %v4381_v41  ;;  %v4056_v41 = vsub.s32 3, %v5542_v43  ;;  %v615_v33 = vld [vmem:[%s5142_s6 + $0x978] sm:$0xff]  ;;  %v4709_v49 = vcombine.low %v747_v23, %v751_v25 }
 0x21e   : > { %3898 = vmatprep.subr.bf16.mxu0 %v4374_v30  ;;  %v4710_v30 = vcombine.high %v747_v23, %v751_v25  ;;  %v4053_v37 = vrot.slane %v5552_v57, %v4052_v3  ;;  %v739_v38 = vld [vmem:[%s5142_s6 + $0xd58] sm:$0xff]  ;;  %v4103_v50 = vrot.slane %v5556_v62, %v4052_v3 }
 0x21f   : > { %3938 = vmatpush2.bf16.msra.mxu1 %v4509_v29  ;;  %v4582_v29 = vcombine.high %v619_v21, %v623_v22  ;;  %v731_v59 = vld [vmem:[%s5142_s6 + $0xd18] sm:$0xff] }
 0x220   : > { %3939 = vmatprep.subr.bf16.mxu1 %v4502_v32  ;;  %v611_v32 = vld [vmem:[%s5142_s6 + $0x958] sm:$0xff] }
 0x221   : > { %3899 = vmatpush2.bf16.msra.mxu0 %v4373_v40  ;;  %v743_v40 = vld [vmem:[%s5142_s6 + $0xd78] sm:$0xff]  ;;  %v4574_v52 = vcombine.high %v611_v32, %v615_v33 }
 0x222   : > { %3900 = vmatprep.subr.bf16.mxu0 %v4366_v45  ;;  %v735_v60 = vld [vmem:[%s5142_s6 + $0xd38] sm:$0xff] }
 0x223   : > { %3940 = vmatpush2.bf16.msra.mxu1 %v4501_v42  ;;  %v4694_v8 = vcombine.high %v731_v59, %v735_v60  ;;  %v599_v9 = vld [vmem:[%s5142_s6 + $0x8f8] sm:$0xff]  ;;  %v4693_v15 = vcombine.low %v731_v59, %v735_v60 }
 0x224   : > { %3941 = vmatprep.subr.bf16.mxu1 %v4494_v46  ;;  %v4581_v46 = vcombine.low %v619_v21, %v623_v22  ;;  %v587_v17 = vld [vmem:[%s5142_s6 + $0x898] sm:$0xff] }
 0x225   : > { %3901 = vmatpush2.bf16.msra.mxu0 %v4365_v53  ;;  %v579_v23 = vld [vmem:[%s5142_s6 + $0x858] sm:$0xff] }
 0x226   : > { %3902 = vmatprep.subr.bf16.mxu0 %v4358_v55  ;;  %v603_v55 = vld [vmem:[%s5142_s6 + $0x918] sm:$0xff] }
 0x227   : > { %3942 = vmatpush2.bf16.msra.mxu1 %v4493_v54  ;;  %v583_v25 = vld [vmem:[%s5142_s6 + $0x878] sm:$0xff] }
 0x228   : > { %3943 = vmatprep.subr.bf16.mxu1 %v4486_v56  ;;  %v607_v56 = vld [vmem:[%s5142_s6 + $0x938] sm:$0xff] }
 0x229   : > { %3903 = vmatpush2.bf16.msra.mxu0 %v4357_v63  ;;  %v4107_v63 = vrot.slane %v5556_v62, %v4056_v41  ;;  %v595_v62 = vld [vmem:[%s5142_s6 + $0x8d8] sm:$0xff] }
 0x22a   : > { %3904 = vmatprep.subr.bf16.mxu0 %v4350_v4  ;;  %v4558_v16 = vcombine.high %v595_v62, %v599_v9 }
 0x22b   : > { %3944 = vmatpush2.bf16.msra.mxu1 %v4485_v1  ;;  %v4573_v1 = vcombine.low %v611_v32, %v615_v33  ;;  %v571_v33 = vld [vmem:[%s5142_s6 + $0x818] sm:$0xff] }
 0x22c   : > { %3945 = vmatprep.subr.bf16.mxu1 %v4478_v5  ;;  %v4566_v5 = vcombine.high %v603_v55, %v607_v56 }
 0x22d   : > { %3905 = vmatpush2.bf16.msra.mxu0 %v4349_v11  ;;  %v723_v11 = vld [vmem:[%s5142_s6 + $0xcd8] sm:$0xff] }
 0x22e   : > { %3906 = vmatprep.subr.bf16.mxu0 %v4342_v13 }
 0x22f   : > { %3946 = vmatpush2.bf16.msra.mxu1 %v4477_v12  ;;  %v727_v12 = vld [vmem:[%s5142_s6 + $0xcf8] sm:$0xff] }
 0x230   : > { %3947 = vmatprep.subr.bf16.mxu1 %v4470_v14  ;;  %v4565_v14 = vcombine.low %v603_v55, %v607_v56  ;;  %v4686_v31 = vcombine.high %v723_v11, %v727_v12  ;;  %v4685_v21 = vcombine.low %v723_v11, %v727_v12  ;;  %v687_v55 = vld [vmem:[%s5142_s6 + $0xbb8] sm:$0xff] }
 0x231   : > { %3907 = vmatpush2.bf16.msra.mxu0 %v4341_v2  ;;  %v591_v2 = vld [vmem:[%s5142_s6 + $0x8b8] sm:$0xff] }
 0x232   : > { %3958 = vmatprep.subr.bf16.mxu0 %v4590_v19  ;;  %v719_v19 = vld [vmem:[%s5142_s6 + $0xcb8] sm:$0xff]  ;;  %v4550_v22 = vcombine.high %v587_v17, %v591_v2 }
 0x233   : > { %3948 = vmatpush2.bf16.msra.mxu1 %v4469_v18  ;;  %v715_v18 = vld [vmem:[%s5142_s6 + $0xc98] sm:$0xff] }
 0x234   : > { %3999 = vmatprep.subr.bf16.mxu1 %v4718_v20  ;;  %v3664_v35 = vpop.f32.mrf.mxu0  ;;  %3909 = vmatmul.mubr.bf16.vlgmr.msra.gmra.mxu0 %v5258_v24  ;;  %v4057_v24 = vrot.slane %v5552_v57, %v4056_v41  ;;  %v4557_v20 = vcombine.low %v595_v62, %v599_v9  ;;  %v4678_v3 = vcombine.high %v715_v18, %v719_v19  ;;  %v811_v56 = vld [vmem:[%s5142_s6 + $0xf98] sm:$0xff] }
 0x235   : > { %v3665_v42 = vadd.f32 %v3664_v35, %v5642_v0  ;;  %3959 = vmatpush1.bf16.msra.mxu0 %v4589_v26  ;;  %3990 = vmatprep.mubr.bf16.mxu0 %v5266_v36  ;;  %v4701_v36 = vcombine.low %v739_v38, %v743_v40  ;;  %v707_v26 = vld [vmem:[%s5142_s6 + $0xc58] sm:$0xff]  ;;  %v4549_v41 = vcombine.low %v587_v17, %v591_v2 }
 0x236   : > { %v3705_v45 = vpop.f32.mrf.mxu1  ;;  %3950 = vmatmul.mubr.bf16.vlgmr.msra.gmra.mxu1 %v5262_v28  ;;  %v3666_v51 = vpop.f32.mrf.mxu0  ;;  %3960 = vmatprep.subr.bf16.mxu0 %v4582_v29  ;;  %v4702_v28 = vcombine.high %v739_v38, %v743_v40  ;;  %v4677_v29 = vcombine.low %v715_v18, %v719_v19  ;;  %v575_v35 = vld [vmem:[%s5142_s6 + $0x838] sm:$0xff]  ;;  %v4541_v40 = vcombine.low %v579_v23, %v583_v25 }
 0x237   : > { %4000 = vmatpush1.bf16.msra.mxu1 %v4717_v27  ;;  %v3706_v53 = vadd.f32 %v3705_v45, %v3665_v42  ;;  %v3667_v0 = vadd.f32 %v3666_v51, %v5647_v10  ;;  %4031 = vmatprep.mubr.bf16.mxu1 %v5271_v39  ;;  %v711_v27 = vld [vmem:[%s5142_s6 + $0xc78] sm:$0xff]  ;;  %v4534_v45 = vcombine.high %v571_v33, %v575_v35 }
 0x238   : > { %v3707_v54 = vpop.f32.mrf.mxu1  ;;  %4001 = vmatprep.subr.bf16.mxu1 %v4710_v30  ;;  %v3668_v58 = vpop.f32.mrf.mxu0  ;;  %v4542_v30 = vcombine.high %v579_v23, %v583_v25  ;;  %v4670_v32 = vcombine.high %v707_v26, %v711_v27  ;;  %v703_v38 = vld [vmem:[%s5142_s6 + $0xc38] sm:$0xff]  ;;  %v4669_v42 = vcombine.low %v707_v26, %v711_v27 }
 0x239   : > { %v4084_v61 = vmul.f32 %v4053_v37, %v3706_v53  ;;  %v3708_v57 = vadd.f32 %v3707_v54, %v3667_v0  ;;  %3961 = vmatpush1.bf16.msra.mxu0 %v4581_v46  ;;  %v699_v37 = vld [vmem:[%s5142_s6 + $0xc18] sm:$0xff] }
 0x23a   : > { %v3709_v10 = vpop.f32.mrf.mxu1  ;;  %v3669_v4 = vpop.f32.mrf.mxu0  ;;  %3962 = vmatprep.subr.bf16.mxu0 %v4574_v52  ;;  %v4662_v46 = vcombine.high %v699_v37, %v703_v38  ;;  %v819_v51 = vld [vmem:[%s5142_s6 + $0xfd8] sm:$0xff]  ;;  %v4533_v52 = vcombine.low %v571_v33, %v575_v35  ;;  %v4661_v53 = vcombine.low %v699_v37, %v703_v38 }
 0x23b   : > { %4002 = vmatpush1.bf16.msra.mxu1 %v4709_v49  ;;  %v5728_v6 = vadd.f32 %v4103_v50, %v4084_v61  ;;  %v4085_v7 = vmul.f32 %v4057_v24, %v3708_v57  ;;  %v691_v49 = vld [vmem:[%s5142_s6 + $0xbd8] sm:$0xff] }
 0x23c   : > { %v3710_v39 = vpop.f32.mrf.mxu1  ;;  %4003 = vmatprep.subr.bf16.mxu1 %v4702_v28  ;;  %v695_v50 = vld [vmem:[%s5142_s6 + $0xbf8] sm:$0xff] }
 0x23d   : > { %v5734_v13 = vadd.f32 %v4107_v63, %v4085_v7  ;;  %3963 = vmatpush1.bf16.msra.mxu0 %v4573_v1  ;;  %v823_v24 = vld [vmem:[%s5142_s6 + $0xff8] sm:$0xff]  ;;  %v4654_v0 = vcombine.high %v691_v49, %v695_v50  ;;  %v4653_v59 = vcombine.low %v691_v49, %v695_v50 }
 0x23e   : > { %3964 = vmatprep.subr.bf16.mxu0 %v4566_v5  ;;  %v4782_v54 = vcombine.high %v819_v51, %v823_v24  ;;  %v683_v28 = vld [vmem:[%s5142_s6 + $0xb98] sm:$0xff]  ;;  %v4781_v60 = vcombine.low %v819_v51, %v823_v24 }
 0x23f   : > { %4004 = vmatpush1.bf16.msra.mxu1 %v4701_v36  ;;  %v815_v58 = vld [vmem:[%s5142_s6 + $0xfb8] sm:$0xff]  ;;  %v4646_v61 = vcombine.high %v683_v28, %v687_v55  ;;  %v4645_v36 = vcombine.low %v683_v28, %v687_v55 }
 0x240   : > { %4005 = vmatprep.subr.bf16.mxu1 %v4694_v8  ;;  %v4774_v57 = vcombine.high %v811_v56, %v815_v58  ;;  %v675_v63 = vld [vmem:[%s5142_s6 + $0xb58] sm:$0xff]  ;;  %v4773_v5 = vcombine.low %v811_v56, %v815_v58 }
 0x241   : > { %3965 = vmatpush1.bf16.msra.mxu0 %v4565_v14  ;;  %v679_v10 = vld [vmem:[%s5142_s6 + $0xb78] sm:$0xff] }
 0x242   : > { %3966 = vmatprep.subr.bf16.mxu0 %v4558_v16  ;;  %v803_v1 = vld [vmem:[%s5142_s6 + $0xf58] sm:$0xff]  ;;  %v4638_v7 = vcombine.high %v675_v63, %v679_v10  ;;  %v4637_v12 = vcombine.low %v675_v63, %v679_v10 }
 0x243   : > { %4006 = vmatpush1.bf16.msra.mxu1 %v4693_v15  ;;  %v807_v4 = vld [vmem:[%s5142_s6 + $0xf78] sm:$0xff] }
 0x244   : > { %4007 = vmatprep.subr.bf16.mxu1 %v4686_v31  ;;  %v4766_v39 = vcombine.high %v803_v1, %v807_v4  ;;  %v667_v8 = vld [vmem:[%s5142_s6 + $0xb18] sm:$0xff]  ;;  %v4765_v14 = vcombine.low %v803_v1, %v807_v4  ;;  %v4060_v4 = vsub.s32 4, %v5542_v43 }
 0x245   : > { %3967 = vmatpush1.bf16.msra.mxu0 %v4557_v20  ;;  %v671_v62 = vld [vmem:[%s5142_s6 + $0xb38] sm:$0xff] }
 0x246   : > { %3968 = vmatprep.subr.bf16.mxu0 %v4550_v22  ;;  %v795_v9 = vld [vmem:[%s5142_s6 + $0xf18] sm:$0xff]  ;;  %v4630_v15 = vcombine.high %v667_v8, %v671_v62  ;;  %v4629_v19 = vcombine.low %v667_v8, %v671_v62 }
 0x247   : > { %4008 = vmatpush1.bf16.msra.mxu1 %v4685_v21  ;;  %v799_v11 = vld [vmem:[%s5142_s6 + $0xf38] sm:$0xff] }
 0x248   : > { %4009 = vmatprep.subr.bf16.mxu1 %v4678_v3  ;;  %v4758_v16 = vcombine.high %v795_v9, %v799_v11  ;;  %v659_v31 = vld [vmem:[%s5142_s6 + $0xad8] sm:$0xff]  ;;  %v4757_v20 = vcombine.low %v795_v9, %v799_v11 }
 0x249   : > { %3969 = vmatpush1.bf16.msra.mxu0 %v4549_v41  ;;  %v663_v17 = vld [vmem:[%s5142_s6 + $0xaf8] sm:$0xff] }
 0x24a   : > { %3970 = vmatprep.subr.bf16.mxu0 %v4542_v30  ;;  %v787_v2 = vld [vmem:[%s5142_s6 + $0xed8] sm:$0xff]  ;;  %v4622_v21 = vcombine.high %v659_v31, %v663_v17  ;;  %v4621_v27 = vcombine.low %v659_v31, %v663_v17 }
 0x24b   : > { %4010 = vmatpush1.bf16.msra.mxu1 %v4677_v29  ;;  %v791_v18 = vld [vmem:[%s5142_s6 + $0xef8] sm:$0xff] }
 0x24c   : > { %4011 = vmatprep.subr.bf16.mxu1 %v4670_v32  ;;  %v4750_v22 = vcombine.high %v787_v2, %v791_v18  ;;  %v651_v3 = vld [vmem:[%s5142_s6 + $0xa98] sm:$0xff]  ;;  %v4749_v41 = vcombine.low %v787_v2, %v791_v18 }
 0x24d   : > { %3971 = vmatpush1.bf16.msra.mxu0 %v4541_v40  ;;  %v655_v23 = vld [vmem:[%s5142_s6 + $0xab8] sm:$0xff] }
 0x24e   : > { %3972 = vmatprep.subr.bf16.mxu0 %v4534_v45  ;;  %v779_v25 = vld [vmem:[%s5142_s6 + $0xe98] sm:$0xff]  ;;  %v4614_v29 = vcombine.high %v651_v3, %v655_v23  ;;  %v4613_v38 = vcombine.low %v651_v3, %v655_v23 }
 0x24f   : > { %4012 = vmatpush1.bf16.msra.mxu1 %v4669_v42  ;;  %v783_v26 = vld [vmem:[%s5142_s6 + $0xeb8] sm:$0xff] }
 0x250   : > { %4013 = vmatprep.subr.bf16.mxu1 %v4662_v46  ;;  %v4742_v30 = vcombine.high %v779_v25, %v783_v26  ;;  %v643_v32 = vld [vmem:[%s5142_s6 + $0xa58] sm:$0xff]  ;;  %v4741_v40 = vcombine.low %v779_v25, %v783_v26 }
 0x251   : > { %3973 = vmatpush1.bf16.msra.mxu0 %v4533_v52  ;;  %v647_v33 = vld [vmem:[%s5142_s6 + $0xa78] sm:$0xff] }
 0x252   : > { %3974 = vmatprep.subr.bf16.mxu0 %v4654_v0  ;;  %v771_v35 = vld [vmem:[%s5142_s6 + $0xe58] sm:$0xff]  ;;  %v4606_v42 = vcombine.high %v643_v32, %v647_v33  ;;  %v4605_v24 = vcombine.low %v643_v32, %v647_v33  ;;  %v4068_v33 = vsub.s32 6, %v5542_v43 }
 0x253   : > { %4014 = vmatpush1.bf16.msra.mxu1 %v4661_v53  ;;  %v775_v37 = vld [vmem:[%s5142_s6 + $0xe78] sm:$0xff] }
 0x254   : > { %4015 = vmatprep.subr.bf16.mxu1 %v4782_v54  ;;  %v4734_v45 = vcombine.high %v771_v35, %v775_v37  ;;  %v635_v46 = vld [vmem:[%s5142_s6 + $0xa18] sm:$0xff]  ;;  %v4733_v52 = vcombine.low %v771_v35, %v775_v37  ;;  %v4072_v37 = vsub.s32 7, %v5542_v43 }
 0x255   : > { %3975 = vmatpush2.bf16.msra.mxu0 %v4653_v59  ;;  %v639_v49 = vld [vmem:[%s5142_s6 + $0xa38] sm:$0xff] }
 0x256   : > { %3976 = vmatprep.subr.bf16.mxu0 %v4646_v61  ;;  %v763_v50 = vld [vmem:[%s5142_s6 + $0xe18] sm:$0xff]  ;;  %v4598_v53 = vcombine.high %v635_v46, %v639_v49  ;;  %v4597_v54 = vcombine.low %v635_v46, %v639_v49 }
 0x257   : > { %4016 = vmatpush2.bf16.msra.mxu1 %v4781_v60  ;;  %v767_v51 = vld [vmem:[%s5142_s6 + $0xe38] sm:$0xff] }
 0x258   : > { %4017 = vmatprep.subr.bf16.mxu1 %v4774_v57  ;;  %v4726_v0 = vcombine.high %v763_v50, %v767_v51  ;;  %v4725_v28 = vcombine.low %v763_v50, %v767_v51  ;;  %v4842_v9 = vld [vmem:[%s5155_s14] sm:$0xff] }
 0x259   : > { %3977 = vmatpush2.bf16.msra.mxu0 %v4645_v36  ;;  %v4064_v36 = vsub.s32 5, %v5542_v43  ;;  %v4111_v11 = vrot.slane %v4842_v9, %v4060_v4  ;;  %v4119_v51 = vrot.slane %v4842_v9, %v4068_v33 }
 0x25a   : > { %3978 = vmatprep.subr.bf16.mxu0 %v4638_v7 }
 0x25b   : > { %4018 = vmatpush2.bf16.msra.mxu1 %v4773_v5  ;;  %v4115_v2 = vrot.slane %v4842_v9, %v4064_v36 }
 0x25c   : > { %4019 = vmatprep.subr.bf16.mxu1 %v4766_v39  ;;  %v4841_v39 = vld [vmem:[%s5149_s12] sm:$0xff] }
 0x25d   : > { %3979 = vmatpush2.bf16.msra.mxu0 %v4637_v12  ;;  %v4061_v8 = vrot.slane %v4841_v39, %v4060_v4  ;;  %v4069_v46 = vrot.slane %v4841_v39, %v4068_v33 }
 0x25e   : > { %3980 = vmatprep.subr.bf16.mxu0 %v4630_v15  ;;  %v4065_v15 = vrot.slane %v4841_v39, %v4064_v36 }
 0x25f   : > { %4020 = vmatpush2.bf16.msra.mxu1 %v4765_v14 }
 0x260   : > { %4021 = vmatprep.subr.bf16.mxu1 %v4758_v16 }
 0x261   : > { %3981 = vmatpush2.bf16.msra.mxu0 %v4629_v19 }
 0x262   : > { %3982 = vmatprep.subr.bf16.mxu0 %v4622_v21 }
 0x263   : > { %4022 = vmatpush2.bf16.msra.mxu1 %v4757_v20 }
 0x264   : > { %4023 = vmatprep.subr.bf16.mxu1 %v4750_v22 }
 0x265   : > { %3983 = vmatpush2.bf16.msra.mxu0 %v4621_v27 }
 0x266   : > { %3984 = vmatprep.subr.bf16.mxu0 %v4614_v29 }
 0x267   : > { %4024 = vmatpush2.bf16.msra.mxu1 %v4749_v41 }
 0x268   : > { %4025 = vmatprep.subr.bf16.mxu1 %v4742_v30 }
 0x269   : > { %3985 = vmatpush2.bf16.msra.mxu0 %v4613_v38 }
 0x26a   : > { %3986 = vmatprep.subr.bf16.mxu0 %v4606_v42 }
 0x26b   : > { %4026 = vmatpush2.bf16.msra.mxu1 %v4741_v40 }
 0x26c   : > { %4027 = vmatprep.subr.bf16.mxu1 %v4734_v45 }
 0x26d   : > { %3987 = vmatpush2.bf16.msra.mxu0 %v4605_v24 }
 0x26e   : > { %3988 = vmatprep.subr.bf16.mxu0 %v4598_v53  ;;  %v4073_v53 = vrot.slane %v4841_v39, %v4072_v37 }
 0x26f   : > { %4028 = vmatpush2.bf16.msra.mxu1 %v4733_v52 }
 0x270   : > { %4029 = vmatprep.subr.bf16.mxu1 %v4726_v0 }
 0x271   : > { %3989 = vmatpush2.bf16.msra.mxu0 %v4597_v54 }
 0x273   : > { %4030 = vmatpush2.bf16.msra.mxu1 %v4725_v28 }
 0x274   : > { %v3746_v55 = vpop.f32.mrf.mxu0  ;;  %3991 = vmatmul.mubr.bf16.vlgmr.msra.gmra.mxu0 %v5334_v44 }
 0x276   : > { %v3787_v56 = vpop.f32.mrf.mxu1  ;;  %4032 = vmatmul.mubr.bf16.vlgmr.msra.gmra.mxu1 %v5338_v47  ;;  %v3748_v59 = vpop.f32.mrf.mxu0 }
 0x277   : > { %v3788_v58 = vadd.f32 %v3787_v56, %v3746_v55  ;;  %v4123_v55 = vrot.slane %v4842_v9, %v4072_v37 }
 0x278   : > { %v3789_v60 = vpop.f32.mrf.mxu1  ;;  %v3750_v57 = vpop.f32.mrf.mxu0 }
 0x279   : > { %v3790_v61 = vadd.f32 %v3789_v60, %v3748_v59 }
 0x27a   : > { %v3791_v63 = vpop.f32.mrf.mxu1  ;;  %v3751_v10 = vpop.f32.mrf.mxu0 }
 0x27c   : > { %v3792_v1 = vpop.f32.mrf.mxu1 }
 0x2b4   : > { %v3828_v5 = vpop.f32.mrf.mxu0 }
 0x2b5   : > { %v3829_v7 = vadd.f32 %v3828_v5, %v3788_v58 }
 0x2b6   : > { %v3869_v44 = vpop.f32.mrf.mxu1  ;;  %v3830_v62 = vpop.f32.mrf.mxu0 }
 0x2b7   : > { %v3870_v47 = vadd.f32 %v3869_v44, %v3829_v7  ;;  %v3831_v12 = vadd.f32 %v3830_v62, %v3790_v61 }
 0x2b8   : > { %v3871_v14 = vpop.f32.mrf.mxu1  ;;  %v3832_v16 = vpop.f32.mrf.mxu0 }
 0x2b9   : > { %v4086_v31 = vmul.f32 %v4061_v8, %v3870_v47  ;;  %v3872_v17 = vadd.f32 %v3871_v14, %v3831_v12 }
 0x2ba   : > { %v3873_v18 = vpop.f32.mrf.mxu1  ;;  %v3833_v19 = vpop.f32.mrf.mxu0 }
 0x2bb   : > { %v4136_v20 = vadd.f32 %v4111_v11, %v4086_v31  ;;  %v4087_v21 = vmul.f32 %v4065_v15, %v3872_v17 }
 0x2bc   : > { %v3874_v22 = vpop.f32.mrf.mxu1 }
 0x2bd   : > { %v4137_v3 = vadd.f32 %v4115_v2, %v4087_v21 }
 0x2f4   : > { %v3910_v23 = vpop.f32.mrf.mxu0 }
 0x2f6   : > { %v3951_v25 = vpop.f32.mrf.mxu1  ;;  %v3912_v26 = vpop.f32.mrf.mxu0 }
 0x2f7   : > { %v3952_v35 = vadd.f32 %v3951_v25, %v3910_v23 }
 0x2f8   : > { %v3953_v27 = vpop.f32.mrf.mxu1  ;;  %v3914_v41 = vpop.f32.mrf.mxu0 }
 0x2f9   : > { %v3954_v40 = vadd.f32 %v3953_v27, %v3912_v26 }
 0x2fa   : > { %v3955_v29 = vpop.f32.mrf.mxu1  ;;  %v3915_v30 = vpop.f32.mrf.mxu0 }
 0x2fc   : > { %v3956_v32 = vpop.f32.mrf.mxu1 }
 0x334   : > { %v3992_v38 = vpop.f32.mrf.mxu0 }
 0x335   : > { %v3993_v42 = vadd.f32 %v3992_v38, %v3952_v35 }
 0x336   : > { %v4033_v45 = vpop.f32.mrf.mxu1  ;;  %v3994_v49 = vpop.f32.mrf.mxu0 }
 0x337   : > { %v4034_v50 = vadd.f32 %v4033_v45, %v3993_v42  ;;  %v3995_v24 = vadd.f32 %v3994_v49, %v3954_v40 }
 0x338   : > { %v4035_v52 = vpop.f32.mrf.mxu1  ;;  %v3996_v0 = vpop.f32.mrf.mxu0 }
 0x339   : > { %v4088_v54 = vmul.f32 %v4069_v46, %v4034_v50  ;;  %v4036_v28 = vadd.f32 %v4035_v52, %v3995_v24  ;;  %4143 = sbr.rel (%p4783_p4) target bundleno = 836 (0x344), region = 56 }
 0x33a   : > { %v4037_v56 = vpop.f32.mrf.mxu1  ;;  %v3997_v58 = vpop.f32.mrf.mxu0 }
 0x33b   : > { %v4138_v59 = vadd.f32 %v4119_v51, %v4088_v54  ;;  %v4089_v60 = vmul.f32 %v4073_v53, %v4036_v28 }
 0x33c   : > { %v4038_v43 = vpop.f32.mrf.mxu1 }
 0x33d   : > { %v4139_v61 = vadd.f32 %v4123_v55, %v4089_v60 }
 0x33e   : > { %v4144_v57 = vmax.f32 %v5576_v34, 0.0  ;;  %v4145_v63 = vmax.f32 %v5582_v48, 0.0  ;;  %v4146_v10 = vmax.f32 %v5728_v6, 0.0  ;;  %v4147_v1 = vmax.f32 %v5734_v13, 0.0 }
 0x33f   : > { %v4148_v4 = vmax.f32 %v4136_v20, 0.0  ;;  %v4149_v36 = vmax.f32 %v4137_v3, 0.0  ;;  %v4150_v5 = vmax.f32 %v4138_v59, 0.0  ;;  %v4151_v7 = vmax.f32 %v4139_v61, 0.0 }
 0x340   : > { %4152 = vst [vmem:[#allocation2 + $0x30] sm:$0xff] %v4144_v57  ;;  %4153 = vst [vmem:[#allocation2] sm:$0xff] %v4145_v63 }
 0x341   : > { %4154 = vst [vmem:[#allocation2 + $0x18] sm:$0xff] %v4146_v10  ;;  %4155 = vst [vmem:[#allocation2 + $0x10] sm:$0xff] %v4147_v1 }
 0x342   : > { %4156 = vst [vmem:[#allocation2 + $0x8] sm:$0xff] %v4148_v4  ;;  %4157 = vst [vmem:[#allocation2 + $0x20] sm:$0xff] %v4149_v36 }
 0x343   : > { %4158 = vst [vmem:[#allocation2 + $0x28] sm:$0xff] %v4150_v5  ;;  %4159 = vst [vmem:[#allocation2 + $0x38] sm:$0xff] %v4151_v7 }
 0x344 PF: > { %p4784_p5 = scmp.ne.s32.totalorder %s5016_s19, 10 }
 0x346   : > { %4163 = sbr.rel (%p4784_p5) target bundleno = 847 (0x34f), region = 60 }
 0x34b   : > { %4164 = vst [vmem:[%s5839_s4] sm:$0xff] %v5576_v34  ;;  %4165 = vst [vmem:[%s5839_s4 + $0x8] sm:$0xff] %v5582_v48 }
 0x34c   : > { %4166 = vst [vmem:[%s5839_s4 + $0x10] sm:$0xff] %v5728_v6  ;;  %4167 = vst [vmem:[%s5839_s4 + $0x18] sm:$0xff] %v5734_v13 }
 0x34d   : > { %4168 = vst [vmem:[%s5839_s4 + $0x20] sm:$0xff] %v4136_v20  ;;  %4169 = vst [vmem:[%s5839_s4 + $0x28] sm:$0xff] %v4137_v3 }
 0x34e   : > { %4170 = vst [vmem:[%s5839_s4 + $0x30] sm:$0xff] %v4138_v59  ;;  %4171 = vst [vmem:[%s5839_s4 + $0x38] sm:$0xff] %v4139_v61 }
 0x34f PF: > { %p17_p6 = scmp.ge.s32.totalorder %s5019_s20, 13   ;;  %s5847_s15 = smov %s4957_s16 }
 0x350   : > { %s5848_s16 = smov %s4961_s17  ;;  %s5849_s17 = smov %s5029_s23 }
 0x351   : > { %s5850_s18 = smov %s5019_s20  ;;  %19 = sbr.rel (!%p17_p6) target bundleno = 5 (0x5), region = 108 }
 0x356   :  { %4183 = vsyncpa [#allocation4], 1 }
 0x357   :  { %4185 = vsyncpa [#allocation4 + $0x1], 1 }
 0x358   :  { %4186 = vsyncpa [#allocation6], 1 }
 0x359   :  { %4188 = vsyncpa [#allocation6 + $0x1], 1 }

</bundles_post_ra>
